<compile_context>
chip_gen: v5e
topology: v5e:2x2
jax: 0.10.0
libtpu: 0.0.40
codegen_flags: <defaults>
</compile_context>

<pallas_src>
import functools

import numpy as np
import jax
import jax.numpy as jnp
from jax import lax
from jax.experimental import pallas as pl
from jax.experimental.pallas import tpu as pltpu

EPS = 1e-5


# --------------------------------- kernel -----------------------------------

def _up_fused_kernel(x2_ref, x1_ref, kt_ref, mask_ref,
                     w1_ref, w2_ref, g1_ref, b1_ref, g2_ref, b2_ref,
                     o_ref, *, W):
    """Whole Up block fused in one grid-less invocation, channel-major (C, P)."""
    N, C2, HW = x2_ref.shape
    P = N * HW

    # upsample(x1): one fixed-weight MXU matmul per image, then
    # torch.cat([x2, x1_up], channel) assembled as (Cin, P) channel-major.
    # Per-image lane offsets (n*HW) are multiples of 128 -> aligned concat.
    x2_cp = jnp.concatenate([x2_ref[n] for n in range(N)], axis=1)        # (C2, P)
    kt = kt_ref[...]                                                      # (HiWi, HW)
    x1u_cp = jnp.concatenate(
        [jnp.dot(x1_ref[n], kt, preferred_element_type=jnp.float32)
         for n in range(N)], axis=1)                                      # (C1, P)
    xcat = jnp.concatenate([x2_cp, x1u_cp], axis=0)                       # (Cin, P)

    def conv3x3(x_cp, w_ref):
        # 3x3 SAME conv as 9 accumulating MXU matmuls on channel-major data.
        # Each tap = lane rotation of the flat (C, P) activation (XLU) times a
        # 0/1 mask killing padding / row-wrap / cross-image contamination.
        acc = None
        for t in range(9):
            ky, kx = t // 3, t % 3
            s = (ky - 1) * W + (kx - 1)                 # flat source offset
            tap = x_cp if s == 0 else pltpu.roll(x_cp, shift=(-s) % P, axis=1)
            if t != 4:                                  # center tap: mask == 1
                tap = tap * mask_ref[t]                 # (1, P) broadcast
            term = jnp.dot(w_ref[t], tap, preferred_element_type=jnp.float32)
            acc = term if acc is None else acc + term
        return acc                                      # (C_out_tap, P)

    def bn_relu(y, g_ref, b_ref):
        # Training-mode BN over the full (N, H, W) batch, per channel (rows).
        m = jnp.mean(y, axis=1, keepdims=True)          # (C, 1)
        yc = y - m                                      # reused for var + norm
        v = jnp.mean(yc * yc, axis=1, keepdims=True)    # biased variance
        s = g_ref[...] * lax.rsqrt(v + EPS)
        return jnp.maximum(yc * s + b_ref[...], 0.0)

    a1 = bn_relu(conv3x3(xcat, w1_ref), g1_ref, b1_ref)  # (Cmid, P)
    a2 = bn_relu(conv3x3(a1, w2_ref), g2_ref, b2_ref)    # (Cout, P)

    # Lane-dense store: each o_ref[n] is a 128-aligned lane slice of (Cout, P).
    for n in range(N):
        o_ref[n] = a2[:, n * HW:(n + 1) * HW]


# --------------------------- static (numpy) constants ------------------------

def _interp_pad_matrix(s_in, s_target):
    """(s_target, s_in) linear map: 2x bilinear upsample (align_corners=True)
    composed with F.pad placement (zero rows at the borders)."""
    s_up = 2 * s_in
    off = (s_target - s_up) // 2
    m = np.zeros((s_target, s_in), np.float32)
    for o in range(s_up):
        if s_in == 1:
            m[off + o, 0] = 1.0
        else:
            src = o * (s_in - 1) / (s_up - 1)
            i0 = min(int(np.floor(src)), s_in - 1)
            i1 = min(i0 + 1, s_in - 1)
            f = src - i0
            m[off + o, i0] += 1.0 - f
            m[off + o, i1] += f
    return m


def _conv_masks(N, H, W):
    """(9, 1, N*H*W) 0/1 masks: tap (ky,kx) valid iff the source pixel of the
    flat lane-shift lies inside the same image and inside the row."""
    P = N * H * W
    yy = np.tile(np.repeat(np.arange(H), W), N)
    xx = np.tile(np.tile(np.arange(W), H), N)
    m = np.zeros((9, 1, P), np.float32)
    for t in range(9):
        ky, kx = t // 3, t % 3
        ok = ((yy + ky - 1 >= 0) & (yy + ky - 1 < H) &
              (xx + kx - 1 >= 0) & (xx + kx - 1 < W))
        m[t, 0] = ok.astype(np.float32)
    return m


# ------------------------------- JAX wrapper ---------------------------------

def up_forward(x1, x2, w1, g1, b1, w2, g2, b2):
    """Forward of Up(bilinear=True). x1, x2 NCHW; w1/w2 HWIO; returns NCHW."""
    N, C2, H, W = x2.shape
    _, C1, Hi, Wi = x1.shape
    Cin = C1 + C2
    Cmid = w1.shape[-1]
    Cout = w2.shape[-1]
    HW = H * W

    # Trace-time numpy constants: Kronecker upsample+pad matrix and conv masks.
    uh = _interp_pad_matrix(Hi, H)                       # (H, Hi)
    uw = _interp_pad_matrix(Wi, W)                       # (W, Wi)
    kt = jnp.asarray(np.kron(uh, uw).T)                  # (Hi*Wi, H*W)
    masks = jnp.asarray(_conv_masks(N, H, W))            # (9, 1, N*H*W)

    # Only free contiguous reshapes in the wrapper — no activation transposes.
    x2_flat = x2.reshape(N, C2, HW).astype(jnp.float32)
    x1_flat = x1.reshape(N, C1, Hi * Wi).astype(jnp.float32)

    # HWIO -> per-tap (9, Cout, Cin) weights for the channel-major matmuls.
    w1_t = jnp.transpose(w1.astype(jnp.float32).reshape(9, Cin, Cmid), (0, 2, 1))
    w2_t = jnp.transpose(w2.astype(jnp.float32).reshape(9, Cmid, Cout), (0, 2, 1))

    out = pl.pallas_call(
        functools.partial(_up_fused_kernel, W=W),
        out_shape=jax.ShapeDtypeStruct((N, Cout, HW), jnp.float32),
    )(x2_flat, x1_flat, kt, masks, w1_t, w2_t,
      g1.reshape(Cmid, 1).astype(jnp.float32),
      b1.reshape(Cmid, 1).astype(jnp.float32),
      g2.reshape(Cout, 1).astype(jnp.float32),
      b2.reshape(Cout, 1).astype(jnp.float32))

    return out.reshape(N, Cout, H, W)


# -------------------------------- reference ----------------------------------

def _bilinear_upsample_x2_align_corners(x):
    """NCHW bilinear 2x upsample, align_corners=True (gather formulation)."""
    N, C, H, W = x.shape
    Ho, Wo = 2 * H, 2 * W

    def coords(n_in, n_out):
        if n_in == 1:
            z = jnp.zeros((n_out,), jnp.int32)
            return z, z, jnp.zeros((n_out,), jnp.float32)
        src = jnp.arange(n_out, dtype=jnp.float32) * (n_in - 1) / (n_out - 1)
        i0 = jnp.clip(jnp.floor(src).astype(jnp.int32), 0, n_in - 1)
        i1 = jnp.minimum(i0 + 1, n_in - 1)
        return i0, i1, src - i0.astype(jnp.float32)

    h0, h1, fh = coords(H, Ho)
    w0, w1, fw = coords(W, Wo)
    xh = (x[:, :, h0, :] * (1.0 - fh)[None, None, :, None]
          + x[:, :, h1, :] * fh[None, None, :, None])
    return (xh[:, :, :, w0] * (1.0 - fw)[None, None, None, :]
            + xh[:, :, :, w1] * fw[None, None, None, :])


def ref_forward(x1, x2, w1, g1, b1, w2, g2, b2):
    x1u = _bilinear_upsample_x2_align_corners(x1)
    diffY = x2.shape[2] - x1u.shape[2]
    diffX = x2.shape[3] - x1u.shape[3]
    x1p = jnp.pad(x1u, ((0, 0), (0, 0),
                        (diffY // 2, diffY - diffY // 2),
                        (diffX // 2, diffX - diffX // 2)))
    x = jnp.concatenate([jnp.transpose(x2, (0, 2, 3, 1)),
                         jnp.transpose(x1p, (0, 2, 3, 1))], axis=-1).astype(jnp.float32)
    dn = ('NHWC', 'HWIO', 'NHWC')

    def conv(a, w):
        return lax.conv_general_dilated(a, w, (1, 1), 'SAME', dimension_numbers=dn)

    def bnr(y, g, b):
        m = jnp.mean(y, axis=(0, 1, 2))
        v = jnp.mean((y - m) ** 2, axis=(0, 1, 2))
        return jnp.maximum((y - m) * lax.rsqrt(v + EPS) * g + b, 0.0)

    y = bnr(conv(x, w1), g1, b1)
    y = bnr(conv(y, w2), g2, b2)
    return jnp.transpose(y, (0, 3, 1, 2))


# ----------------------------------- main -------------------------------------

if __name__ == "__main__":
    # Up(in_channels=8, out_channels=8, bilinear=True): mid_channels = 4
    IN_CH, OUT_CH = 8, 8
    MID_CH = IN_CH // 2
    N = 2

    key = jax.random.PRNGKey(0)
    k = jax.random.split(key, 8)
    # x1: deeper feature (in_channels//2 channels, smaller spatial)
    x1 = jax.random.normal(k[0], (N, IN_CH // 2, 7, 7), jnp.float32)
    # x2: skip connection (in_channels//2 channels)
    x2 = jax.random.normal(k[1], (N, IN_CH // 2, 16, 16), jnp.float32)

    # Conv weights (torch OIHW) -> HWIO
    w1_oihw = 0.1 * jax.random.normal(k[2], (MID_CH, IN_CH, 3, 3), jnp.float32)
    w2_oihw = 0.1 * jax.random.normal(k[3], (OUT_CH, MID_CH, 3, 3), jnp.float32)
    w1 = jnp.transpose(w1_oihw, (2, 3, 1, 0))   # (3,3,8,4)
    w2 = jnp.transpose(w2_oihw, (2, 3, 1, 0))   # (3,3,4,8)

    # BatchNorm affine params
    g1 = 1.0 + 0.1 * jax.random.normal(k[4], (MID_CH,), jnp.float32)
    b1 = 0.1 * jax.random.normal(k[5], (MID_CH,), jnp.float32)
    g2 = 1.0 + 0.1 * jax.random.normal(k[6], (OUT_CH,), jnp.float32)
    b2 = 0.1 * jax.random.normal(k[7], (OUT_CH,), jnp.float32)

    fwd = jax.jit(up_forward)
    out = jax.block_until_ready(fwd(x1, x2, w1, g1, b1, w2, g2, b2))

    ref = jax.block_until_ready(ref_forward(x1, x2, w1, g1, b1, w2, g2, b2))
    assert out.shape == (N, OUT_CH, 16, 16), out.shape
    np.testing.assert_allclose(np.asarray(out), np.asarray(ref), rtol=1e-4, atol=1e-4)

    print("KERNEL_OK")
</pallas_src>

<mosaic_0001>
module attributes {stable_mosaic.version = 11 : i64} {
  func.func @_up_fused_kernel(%arg0: memref<2x4x256xf32, #tpu.memory_space<vmem>>, %arg1: memref<2x4x49xf32, #tpu.memory_space<vmem>>, %arg2: memref<49x256xf32, #tpu.memory_space<vmem>>, %arg3: memref<9x1x512xf32, #tpu.memory_space<vmem>>, %arg4: memref<9x4x8xf32, #tpu.memory_space<vmem>>, %arg5: memref<9x8x4xf32, #tpu.memory_space<vmem>>, %arg6: memref<4x1xf32, #tpu.memory_space<vmem>>, %arg7: memref<4x1xf32, #tpu.memory_space<vmem>>, %arg8: memref<8x1xf32, #tpu.memory_space<vmem>>, %arg9: memref<8x1xf32, #tpu.memory_space<vmem>>, %arg10: memref<2x8x256xf32, #tpu.memory_space<vmem>>) attributes {dimension_semantics = [], scalar_prefetch = 0 : i64, scratch_operands = 0 : i64, tpu.core_type = #tpu.core_type<tc>} {
    %c0 = arith.constant 0 : index
    %c0_0 = arith.constant 0 : index
    %c0_1 = arith.constant 0 : index
    %0 = vector.load %arg0[%c0, %c0_0, %c0_1] : memref<2x4x256xf32, #tpu.memory_space<vmem>>, vector<1x4x256xf32>
    %1 = vector.shape_cast %0 : vector<1x4x256xf32> to vector<4x256xf32>
    %c1 = arith.constant 1 : index
    %c0_2 = arith.constant 0 : index
    %c0_3 = arith.constant 0 : index
    %2 = vector.load %arg0[%c1, %c0_2, %c0_3] : memref<2x4x256xf32, #tpu.memory_space<vmem>>, vector<1x4x256xf32>
    %3 = vector.shape_cast %2 : vector<1x4x256xf32> to vector<4x256xf32>
    %4 = tpu.concatenate %1, %3 in 1 : vector<4x256xf32>, vector<4x256xf32> -> vector<4x512xf32>
    %c0_4 = arith.constant 0 : index
    %c0_5 = arith.constant 0 : index
    %5 = vector.load %arg2[%c0_4, %c0_5] : memref<49x256xf32, #tpu.memory_space<vmem>>, vector<49x256xf32>
    %c0_6 = arith.constant 0 : index
    %c0_7 = arith.constant 0 : index
    %c0_8 = arith.constant 0 : index
    %6 = vector.load %arg1[%c0_6, %c0_7, %c0_8] : memref<2x4x49xf32, #tpu.memory_space<vmem>>, vector<1x4x49xf32>
    %7 = vector.shape_cast %6 : vector<1x4x49xf32> to vector<4x49xf32>
    %cst = arith.constant dense<0.000000e+00> : vector<4x256xf32>
    %8 = tpu.matmul %7, %5, %cst {dimension_numbers = #tpu.dot_dimension_numbers<[1], [0], [0], [1], [0, 0, 1, 1], [], []>} : vector<4x49xf32>, vector<49x256xf32>, vector<4x256xf32> -> vector<4x256xf32>
    %c1_9 = arith.constant 1 : index
    %c0_10 = arith.constant 0 : index
    %c0_11 = arith.constant 0 : index
    %9 = vector.load %arg1[%c1_9, %c0_10, %c0_11] : memref<2x4x49xf32, #tpu.memory_space<vmem>>, vector<1x4x49xf32>
    %10 = vector.shape_cast %9 : vector<1x4x49xf32> to vector<4x49xf32>
    %cst_12 = arith.constant dense<0.000000e+00> : vector<4x256xf32>
    %11 = tpu.matmul %10, %5, %cst_12 {dimension_numbers = #tpu.dot_dimension_numbers<[1], [0], [0], [1], [0, 0, 1, 1], [], []>} : vector<4x49xf32>, vector<49x256xf32>, vector<4x256xf32> -> vector<4x256xf32>
    %12 = tpu.concatenate %8, %11 in 1 : vector<4x256xf32>, vector<4x256xf32> -> vector<4x512xf32>
    %13 = tpu.concatenate %4, %12 in 0 : vector<4x512xf32>, vector<4x512xf32> -> vector<8x512xf32>
    %c17_i32 = arith.constant 17 : i32
    %14 = tpu.dynamic_rotate %13 by %c17_i32 dim 1 : vector<8x512xf32>, i32 -> vector<8x512xf32>
    %c0_13 = arith.constant 0 : index
    %c0_14 = arith.constant 0 : index
    %c0_15 = arith.constant 0 : index
    %15 = vector.load %arg3[%c0_13, %c0_14, %c0_15] : memref<9x1x512xf32, #tpu.memory_space<vmem>>, vector<1x1x512xf32>
    %16 = vector.shape_cast %15 : vector<1x1x512xf32> to vector<1x512xf32>
    %17 = vector.broadcast %16 : vector<1x512xf32> to vector<8x512xf32>
    %18 = arith.mulf %14, %17 : vector<8x512xf32>
    %c0_16 = arith.constant 0 : index
    %c0_17 = arith.constant 0 : index
    %c0_18 = arith.constant 0 : index
    %19 = vector.load %arg4[%c0_16, %c0_17, %c0_18] : memref<9x4x8xf32, #tpu.memory_space<vmem>>, vector<1x4x8xf32>
    %20 = vector.shape_cast %19 : vector<1x4x8xf32> to vector<4x8xf32>
    %cst_19 = arith.constant dense<0.000000e+00> : vector<4x512xf32>
    %21 = tpu.matmul %20, %18, %cst_19 {dimension_numbers = #tpu.dot_dimension_numbers<[1], [0], [0], [1], [0, 0, 1, 1], [], []>} : vector<4x8xf32>, vector<8x512xf32>, vector<4x512xf32> -> vector<4x512xf32>
    %c16_i32 = arith.constant 16 : i32
    %22 = tpu.dynamic_rotate %13 by %c16_i32 dim 1 : vector<8x512xf32>, i32 -> vector<8x512xf32>
    %c1_20 = arith.constant 1 : index
    %c0_21 = arith.constant 0 : index
    %c0_22 = arith.constant 0 : index
    %23 = vector.load %arg3[%c1_20, %c0_21, %c0_22] : memref<9x1x512xf32, #tpu.memory_space<vmem>>, vector<1x1x512xf32>
    %24 = vector.shape_cast %23 : vector<1x1x512xf32> to vector<1x512xf32>
    %25 = vector.broadcast %24 : vector<1x512xf32> to vector<8x512xf32>
    %26 = arith.mulf %22, %25 : vector<8x512xf32>
    %c1_23 = arith.constant 1 : index
    %c0_24 = arith.constant 0 : index
    %c0_25 = arith.constant 0 : index
    %27 = vector.load %arg4[%c1_23, %c0_24, %c0_25] : memref<9x4x8xf32, #tpu.memory_space<vmem>>, vector<1x4x8xf32>
    %28 = vector.shape_cast %27 : vector<1x4x8xf32> to vector<4x8xf32>
    %cst_26 = arith.constant dense<0.000000e+00> : vector<4x512xf32>
    %29 = tpu.matmul %28, %26, %cst_26 {dimension_numbers = #tpu.dot_dimension_numbers<[1], [0], [0], [1], [0, 0, 1, 1], [], []>} : vector<4x8xf32>, vector<8x512xf32>, vector<4x512xf32> -> vector<4x512xf32>
    %30 = arith.addf %21, %29 : vector<4x512xf32>
    %c15_i32 = arith.constant 15 : i32
    %31 = tpu.dynamic_rotate %13 by %c15_i32 dim 1 : vector<8x512xf32>, i32 -> vector<8x512xf32>
    %c2 = arith.constant 2 : index
    %c0_27 = arith.constant 0 : index
    %c0_28 = arith.constant 0 : index
    %32 = vector.load %arg3[%c2, %c0_27, %c0_28] : memref<9x1x512xf32, #tpu.memory_space<vmem>>, vector<1x1x512xf32>
    %33 = vector.shape_cast %32 : vector<1x1x512xf32> to vector<1x512xf32>
    %34 = vector.broadcast %33 : vector<1x512xf32> to vector<8x512xf32>
    %35 = arith.mulf %31, %34 : vector<8x512xf32>
    %c2_29 = arith.constant 2 : index
    %c0_30 = arith.constant 0 : index
    %c0_31 = arith.constant 0 : index
    %36 = vector.load %arg4[%c2_29, %c0_30, %c0_31] : memref<9x4x8xf32, #tpu.memory_space<vmem>>, vector<1x4x8xf32>
    %37 = vector.shape_cast %36 : vector<1x4x8xf32> to vector<4x8xf32>
    %cst_32 = arith.constant dense<0.000000e+00> : vector<4x512xf32>
    %38 = tpu.matmul %37, %35, %cst_32 {dimension_numbers = #tpu.dot_dimension_numbers<[1], [0], [0], [1], [0, 0, 1, 1], [], []>} : vector<4x8xf32>, vector<8x512xf32>, vector<4x512xf32> -> vector<4x512xf32>
    %39 = arith.addf %30, %38 : vector<4x512xf32>
    %c1_i32 = arith.constant 1 : i32
    %40 = tpu.dynamic_rotate %13 by %c1_i32 dim 1 : vector<8x512xf32>, i32 -> vector<8x512xf32>
    %c3 = arith.constant 3 : index
    %c0_33 = arith.constant 0 : index
    %c0_34 = arith.constant 0 : index
    %41 = vector.load %arg3[%c3, %c0_33, %c0_34] : memref<9x1x512xf32, #tpu.memory_space<vmem>>, vector<1x1x512xf32>
    %42 = vector.shape_cast %41 : vector<1x1x512xf32> to vector<1x512xf32>
    %43 = vector.broadcast %42 : vector<1x512xf32> to vector<8x512xf32>
    %44 = arith.mulf %40, %43 : vector<8x512xf32>
    %c3_35 = arith.constant 3 : index
    %c0_36 = arith.constant 0 : index
    %c0_37 = arith.constant 0 : index
    %45 = vector.load %arg4[%c3_35, %c0_36, %c0_37] : memref<9x4x8xf32, #tpu.memory_space<vmem>>, vector<1x4x8xf32>
    %46 = vector.shape_cast %45 : vector<1x4x8xf32> to vector<4x8xf32>
    %cst_38 = arith.constant dense<0.000000e+00> : vector<4x512xf32>
    %47 = tpu.matmul %46, %44, %cst_38 {dimension_numbers = #tpu.dot_dimension_numbers<[1], [0], [0], [1], [0, 0, 1, 1], [], []>} : vector<4x8xf32>, vector<8x512xf32>, vector<4x512xf32> -> vector<4x512xf32>
    %48 = arith.addf %39, %47 : vector<4x512xf32>
    %c4 = arith.constant 4 : index
    %c0_39 = arith.constant 0 : index
    %c0_40 = arith.constant 0 : index
    %49 = vector.load %arg4[%c4, %c0_39, %c0_40] : memref<9x4x8xf32, #tpu.memory_space<vmem>>, vector<1x4x8xf32>
    %50 = vector.shape_cast %49 : vector<1x4x8xf32> to vector<4x8xf32>
    %cst_41 = arith.constant dense<0.000000e+00> : vector<4x512xf32>
    %51 = tpu.matmul %50, %13, %cst_41 {dimension_numbers = #tpu.dot_dimension_numbers<[1], [0], [0], [1], [0, 0, 1, 1], [], []>} : vector<4x8xf32>, vector<8x512xf32>, vector<4x512xf32> -> vector<4x512xf32>
    %52 = arith.addf %48, %51 : vector<4x512xf32>
    %c511_i32 = arith.constant 511 : i32
    %53 = tpu.dynamic_rotate %13 by %c511_i32 dim 1 : vector<8x512xf32>, i32 -> vector<8x512xf32>
    %c5 = arith.constant 5 : index
    %c0_42 = arith.constant 0 : index
    %c0_43 = arith.constant 0 : index
    %54 = vector.load %arg3[%c5, %c0_42, %c0_43] : memref<9x1x512xf32, #tpu.memory_space<vmem>>, vector<1x1x512xf32>
    %55 = vector.shape_cast %54 : vector<1x1x512xf32> to vector<1x512xf32>
    %56 = vector.broadcast %55 : vector<1x512xf32> to vector<8x512xf32>
    %57 = arith.mulf %53, %56 : vector<8x512xf32>
    %c5_44 = arith.constant 5 : index
    %c0_45 = arith.constant 0 : index
    %c0_46 = arith.constant 0 : index
    %58 = vector.load %arg4[%c5_44, %c0_45, %c0_46] : memref<9x4x8xf32, #tpu.memory_space<vmem>>, vector<1x4x8xf32>
    %59 = vector.shape_cast %58 : vector<1x4x8xf32> to vector<4x8xf32>
    %cst_47 = arith.constant dense<0.000000e+00> : vector<4x512xf32>
    %60 = tpu.matmul %59, %57, %cst_47 {dimension_numbers = #tpu.dot_dimension_numbers<[1], [0], [0], [1], [0, 0, 1, 1], [], []>} : vector<4x8xf32>, vector<8x512xf32>, vector<4x512xf32> -> vector<4x512xf32>
    %61 = arith.addf %52, %60 : vector<4x512xf32>
    %c497_i32 = arith.constant 497 : i32
    %62 = tpu.dynamic_rotate %13 by %c497_i32 dim 1 : vector<8x512xf32>, i32 -> vector<8x512xf32>
    %c6 = arith.constant 6 : index
    %c0_48 = arith.constant 0 : index
    %c0_49 = arith.constant 0 : index
    %63 = vector.load %arg3[%c6, %c0_48, %c0_49] : memref<9x1x512xf32, #tpu.memory_space<vmem>>, vector<1x1x512xf32>
    %64 = vector.shape_cast %63 : vector<1x1x512xf32> to vector<1x512xf32>
    %65 = vector.broadcast %64 : vector<1x512xf32> to vector<8x512xf32>
    %66 = arith.mulf %62, %65 : vector<8x512xf32>
    %c6_50 = arith.constant 6 : index
    %c0_51 = arith.constant 0 : index
    %c0_52 = arith.constant 0 : index
    %67 = vector.load %arg4[%c6_50, %c0_51, %c0_52] : memref<9x4x8xf32, #tpu.memory_space<vmem>>, vector<1x4x8xf32>
    %68 = vector.shape_cast %67 : vector<1x4x8xf32> to vector<4x8xf32>
    %cst_53 = arith.constant dense<0.000000e+00> : vector<4x512xf32>
    %69 = tpu.matmul %68, %66, %cst_53 {dimension_numbers = #tpu.dot_dimension_numbers<[1], [0], [0], [1], [0, 0, 1, 1], [], []>} : vector<4x8xf32>, vector<8x512xf32>, vector<4x512xf32> -> vector<4x512xf32>
    %70 = arith.addf %61, %69 : vector<4x512xf32>
    %c496_i32 = arith.constant 496 : i32
    %71 = tpu.dynamic_rotate %13 by %c496_i32 dim 1 : vector<8x512xf32>, i32 -> vector<8x512xf32>
    %c7 = arith.constant 7 : index
    %c0_54 = arith.constant 0 : index
    %c0_55 = arith.constant 0 : index
    %72 = vector.load %arg3[%c7, %c0_54, %c0_55] : memref<9x1x512xf32, #tpu.memory_space<vmem>>, vector<1x1x512xf32>
    %73 = vector.shape_cast %72 : vector<1x1x512xf32> to vector<1x512xf32>
    %74 = vector.broadcast %73 : vector<1x512xf32> to vector<8x512xf32>
    %75 = arith.mulf %71, %74 : vector<8x512xf32>
    %c7_56 = arith.constant 7 : index
    %c0_57 = arith.constant 0 : index
    %c0_58 = arith.constant 0 : index
    %76 = vector.load %arg4[%c7_56, %c0_57, %c0_58] : memref<9x4x8xf32, #tpu.memory_space<vmem>>, vector<1x4x8xf32>
    %77 = vector.shape_cast %76 : vector<1x4x8xf32> to vector<4x8xf32>
    %cst_59 = arith.constant dense<0.000000e+00> : vector<4x512xf32>
    %78 = tpu.matmul %77, %75, %cst_59 {dimension_numbers = #tpu.dot_dimension_numbers<[1], [0], [0], [1], [0, 0, 1, 1], [], []>} : vector<4x8xf32>, vector<8x512xf32>, vector<4x512xf32> -> vector<4x512xf32>
    %79 = arith.addf %70, %78 : vector<4x512xf32>
    %c495_i32 = arith.constant 495 : i32
    %80 = tpu.dynamic_rotate %13 by %c495_i32 dim 1 : vector<8x512xf32>, i32 -> vector<8x512xf32>
    %c8 = arith.constant 8 : index
    %c0_60 = arith.constant 0 : index
    %c0_61 = arith.constant 0 : index
    %81 = vector.load %arg3[%c8, %c0_60, %c0_61] : memref<9x1x512xf32, #tpu.memory_space<vmem>>, vector<1x1x512xf32>
    %82 = vector.shape_cast %81 : vector<1x1x512xf32> to vector<1x512xf32>
    %83 = vector.broadcast %82 : vector<1x512xf32> to vector<8x512xf32>
    %84 = arith.mulf %80, %83 : vector<8x512xf32>
    %c8_62 = arith.constant 8 : index
    %c0_63 = arith.constant 0 : index
    %c0_64 = arith.constant 0 : index
    %85 = vector.load %arg4[%c8_62, %c0_63, %c0_64] : memref<9x4x8xf32, #tpu.memory_space<vmem>>, vector<1x4x8xf32>
    %86 = vector.shape_cast %85 : vector<1x4x8xf32> to vector<4x8xf32>
    %cst_65 = arith.constant dense<0.000000e+00> : vector<4x512xf32>
    %87 = tpu.matmul %86, %84, %cst_65 {dimension_numbers = #tpu.dot_dimension_numbers<[1], [0], [0], [1], [0, 0, 1, 1], [], []>} : vector<4x8xf32>, vector<8x512xf32>, vector<4x512xf32> -> vector<4x512xf32>
    %88 = arith.addf %79, %87 : vector<4x512xf32>
    %cst_66 = arith.constant dense<0.000000e+00> : vector<4xf32>
    %89 = vector.multi_reduction <add>, %88, %cst_66 [1] : vector<4x512xf32> to vector<4xf32>
    %90 = vector.shape_cast %89 : vector<4xf32> to vector<4x1xf32>
    %cst_67 = arith.constant 5.120000e+02 : f32
    %91 = vector.broadcast %cst_67 : f32 to vector<4x1xf32>
    %92 = arith.divf %90, %91 : vector<4x1xf32>
    %93 = vector.broadcast %92 : vector<4x1xf32> to vector<4x512xf32>
    %94 = arith.subf %88, %93 : vector<4x512xf32>
    %95 = arith.mulf %94, %94 : vector<4x512xf32>
    %cst_68 = arith.constant dense<0.000000e+00> : vector<4xf32>
    %96 = vector.multi_reduction <add>, %95, %cst_68 [1] : vector<4x512xf32> to vector<4xf32>
    %97 = vector.shape_cast %96 : vector<4xf32> to vector<4x1xf32>
    %cst_69 = arith.constant 5.120000e+02 : f32
    %98 = vector.broadcast %cst_69 : f32 to vector<4x1xf32>
    %99 = arith.divf %97, %98 : vector<4x1xf32>
    %c0_70 = arith.constant 0 : index
    %c0_71 = arith.constant 0 : index
    %100 = vector.load %arg6[%c0_70, %c0_71] : memref<4x1xf32, #tpu.memory_space<vmem>>, vector<4x1xf32>
    %cst_72 = arith.constant 9.99999974E-6 : f32
    %101 = vector.broadcast %cst_72 : f32 to vector<4x1xf32>
    %102 = arith.addf %99, %101 : vector<4x1xf32>
    %103 = math.rsqrt %102 : vector<4x1xf32>
    %104 = arith.mulf %100, %103 : vector<4x1xf32>
    %105 = vector.broadcast %104 : vector<4x1xf32> to vector<4x512xf32>
    %106 = arith.mulf %94, %105 : vector<4x512xf32>
    %c0_73 = arith.constant 0 : index
    %c0_74 = arith.constant 0 : index
    %107 = vector.load %arg7[%c0_73, %c0_74] : memref<4x1xf32, #tpu.memory_space<vmem>>, vector<4x1xf32>
    %108 = vector.broadcast %107 : vector<4x1xf32> to vector<4x512xf32>
    %109 = arith.addf %106, %108 : vector<4x512xf32>
    %cst_75 = arith.constant 0.000000e+00 : f32
    %110 = vector.broadcast %cst_75 : f32 to vector<4x512xf32>
    %111 = arith.maximumf %109, %110 : vector<4x512xf32>
    %c17_i32_76 = arith.constant 17 : i32
    %112 = tpu.dynamic_rotate %111 by %c17_i32_76 dim 1 : vector<4x512xf32>, i32 -> vector<4x512xf32>
    %c0_77 = arith.constant 0 : index
    %c0_78 = arith.constant 0 : index
    %c0_79 = arith.constant 0 : index
    %113 = vector.load %arg3[%c0_77, %c0_78, %c0_79] : memref<9x1x512xf32, #tpu.memory_space<vmem>>, vector<1x1x512xf32>
    %114 = vector.shape_cast %113 : vector<1x1x512xf32> to vector<1x512xf32>
    %115 = vector.broadcast %114 : vector<1x512xf32> to vector<4x512xf32>
    %116 = arith.mulf %112, %115 : vector<4x512xf32>
    %c0_80 = arith.constant 0 : index
    %c0_81 = arith.constant 0 : index
    %c0_82 = arith.constant 0 : index
    %117 = vector.load %arg5[%c0_80, %c0_81, %c0_82] : memref<9x8x4xf32, #tpu.memory_space<vmem>>, vector<1x8x4xf32>
    %118 = vector.shape_cast %117 : vector<1x8x4xf32> to vector<8x4xf32>
    %cst_83 = arith.constant dense<0.000000e+00> : vector<8x512xf32>
    %119 = tpu.matmul %118, %116, %cst_83 {dimension_numbers = #tpu.dot_dimension_numbers<[1], [0], [0], [1], [0, 0, 1, 1], [], []>} : vector<8x4xf32>, vector<4x512xf32>, vector<8x512xf32> -> vector<8x512xf32>
    %c16_i32_84 = arith.constant 16 : i32
    %120 = tpu.dynamic_rotate %111 by %c16_i32_84 dim 1 : vector<4x512xf32>, i32 -> vector<4x512xf32>
    %c1_85 = arith.constant 1 : index
    %c0_86 = arith.constant 0 : index
    %c0_87 = arith.constant 0 : index
    %121 = vector.load %arg3[%c1_85, %c0_86, %c0_87] : memref<9x1x512xf32, #tpu.memory_space<vmem>>, vector<1x1x512xf32>
    %122 = vector.shape_cast %121 : vector<1x1x512xf32> to vector<1x512xf32>
    %123 = vector.broadcast %122 : vector<1x512xf32> to vector<4x512xf32>
    %124 = arith.mulf %120, %123 : vector<4x512xf32>
    %c1_88 = arith.constant 1 : index
    %c0_89 = arith.constant 0 : index
    %c0_90 = arith.constant 0 : index
    %125 = vector.load %arg5[%c1_88, %c0_89, %c0_90] : memref<9x8x4xf32, #tpu.memory_space<vmem>>, vector<1x8x4xf32>
    %126 = vector.shape_cast %125 : vector<1x8x4xf32> to vector<8x4xf32>
    %cst_91 = arith.constant dense<0.000000e+00> : vector<8x512xf32>
    %127 = tpu.matmul %126, %124, %cst_91 {dimension_numbers = #tpu.dot_dimension_numbers<[1], [0], [0], [1], [0, 0, 1, 1], [], []>} : vector<8x4xf32>, vector<4x512xf32>, vector<8x512xf32> -> vector<8x512xf32>
    %128 = arith.addf %119, %127 : vector<8x512xf32>
    %c15_i32_92 = arith.constant 15 : i32
    %129 = tpu.dynamic_rotate %111 by %c15_i32_92 dim 1 : vector<4x512xf32>, i32 -> vector<4x512xf32>
    %c2_93 = arith.constant 2 : index
    %c0_94 = arith.constant 0 : index
    %c0_95 = arith.constant 0 : index
    %130 = vector.load %arg3[%c2_93, %c0_94, %c0_95] : memref<9x1x512xf32, #tpu.memory_space<vmem>>, vector<1x1x512xf32>
    %131 = vector.shape_cast %130 : vector<1x1x512xf32> to vector<1x512xf32>
    %132 = vector.broadcast %131 : vector<1x512xf32> to vector<4x512xf32>
    %133 = arith.mulf %129, %132 : vector<4x512xf32>
    %c2_96 = arith.constant 2 : index
    %c0_97 = arith.constant 0 : index
    %c0_98 = arith.constant 0 : index
    %134 = vector.load %arg5[%c2_96, %c0_97, %c0_98] : memref<9x8x4xf32, #tpu.memory_space<vmem>>, vector<1x8x4xf32>
    %135 = vector.shape_cast %134 : vector<1x8x4xf32> to vector<8x4xf32>
    %cst_99 = arith.constant dense<0.000000e+00> : vector<8x512xf32>
    %136 = tpu.matmul %135, %133, %cst_99 {dimension_numbers = #tpu.dot_dimension_numbers<[1], [0], [0], [1], [0, 0, 1, 1], [], []>} : vector<8x4xf32>, vector<4x512xf32>, vector<8x512xf32> -> vector<8x512xf32>
    %137 = arith.addf %128, %136 : vector<8x512xf32>
    %c1_i32_100 = arith.constant 1 : i32
    %138 = tpu.dynamic_rotate %111 by %c1_i32_100 dim 1 : vector<4x512xf32>, i32 -> vector<4x512xf32>
    %c3_101 = arith.constant 3 : index
    %c0_102 = arith.constant 0 : index
    %c0_103 = arith.constant 0 : index
    %139 = vector.load %arg3[%c3_101, %c0_102, %c0_103] : memref<9x1x512xf32, #tpu.memory_space<vmem>>, vector<1x1x512xf32>
    %140 = vector.shape_cast %139 : vector<1x1x512xf32> to vector<1x512xf32>
    %141 = vector.broadcast %140 : vector<1x512xf32> to vector<4x512xf32>
    %142 = arith.mulf %138, %141 : vector<4x512xf32>
    %c3_104 = arith.constant 3 : index
    %c0_105 = arith.constant 0 : index
    %c0_106 = arith.constant 0 : index
    %143 = vector.load %arg5[%c3_104, %c0_105, %c0_106] : memref<9x8x4xf32, #tpu.memory_space<vmem>>, vector<1x8x4xf32>
    %144 = vector.shape_cast %143 : vector<1x8x4xf32> to vector<8x4xf32>
    %cst_107 = arith.constant dense<0.000000e+00> : vector<8x512xf32>
    %145 = tpu.matmul %144, %142, %cst_107 {dimension_numbers = #tpu.dot_dimension_numbers<[1], [0], [0], [1], [0, 0, 1, 1], [], []>} : vector<8x4xf32>, vector<4x512xf32>, vector<8x512xf32> -> vector<8x512xf32>
    %146 = arith.addf %137, %145 : vector<8x512xf32>
    %c4_108 = arith.constant 4 : index
    %c0_109 = arith.constant 0 : index
    %c0_110 = arith.constant 0 : index
    %147 = vector.load %arg5[%c4_108, %c0_109, %c0_110] : memref<9x8x4xf32, #tpu.memory_space<vmem>>, vector<1x8x4xf32>
    %148 = vector.shape_cast %147 : vector<1x8x4xf32> to vector<8x4xf32>
    %cst_111 = arith.constant dense<0.000000e+00> : vector<8x512xf32>
    %149 = tpu.matmul %148, %111, %cst_111 {dimension_numbers = #tpu.dot_dimension_numbers<[1], [0], [0], [1], [0, 0, 1, 1], [], []>} : vector<8x4xf32>, vector<4x512xf32>, vector<8x512xf32> -> vector<8x512xf32>
    %150 = arith.addf %146, %149 : vector<8x512xf32>
    %c511_i32_112 = arith.constant 511 : i32
    %151 = tpu.dynamic_rotate %111 by %c511_i32_112 dim 1 : vector<4x512xf32>, i32 -> vector<4x512xf32>
    %c5_113 = arith.constant 5 : index
    %c0_114 = arith.constant 0 : index
    %c0_115 = arith.constant 0 : index
    %152 = vector.load %arg3[%c5_113, %c0_114, %c0_115] : memref<9x1x512xf32, #tpu.memory_space<vmem>>, vector<1x1x512xf32>
    %153 = vector.shape_cast %152 : vector<1x1x512xf32> to vector<1x512xf32>
    %154 = vector.broadcast %153 : vector<1x512xf32> to vector<4x512xf32>
    %155 = arith.mulf %151, %154 : vector<4x512xf32>
    %c5_116 = arith.constant 5 : index
    %c0_117 = arith.constant 0 : index
    %c0_118 = arith.constant 0 : index
    %156 = vector.load %arg5[%c5_116, %c0_117, %c0_118] : memref<9x8x4xf32, #tpu.memory_space<vmem>>, vector<1x8x4xf32>
    %157 = vector.shape_cast %156 : vector<1x8x4xf32> to vector<8x4xf32>
    %cst_119 = arith.constant dense<0.000000e+00> : vector<8x512xf32>
    %158 = tpu.matmul %157, %155, %cst_119 {dimension_numbers = #tpu.dot_dimension_numbers<[1], [0], [0], [1], [0, 0, 1, 1], [], []>} : vector<8x4xf32>, vector<4x512xf32>, vector<8x512xf32> -> vector<8x512xf32>
    %159 = arith.addf %150, %158 : vector<8x512xf32>
    %c497_i32_120 = arith.constant 497 : i32
    %160 = tpu.dynamic_rotate %111 by %c497_i32_120 dim 1 : vector<4x512xf32>, i32 -> vector<4x512xf32>
    %c6_121 = arith.constant 6 : index
    %c0_122 = arith.constant 0 : index
    %c0_123 = arith.constant 0 : index
    %161 = vector.load %arg3[%c6_121, %c0_122, %c0_123] : memref<9x1x512xf32, #tpu.memory_space<vmem>>, vector<1x1x512xf32>
    %162 = vector.shape_cast %161 : vector<1x1x512xf32> to vector<1x512xf32>
    %163 = vector.broadcast %162 : vector<1x512xf32> to vector<4x512xf32>
    %164 = arith.mulf %160, %163 : vector<4x512xf32>
    %c6_124 = arith.constant 6 : index
    %c0_125 = arith.constant 0 : index
    %c0_126 = arith.constant 0 : index
    %165 = vector.load %arg5[%c6_124, %c0_125, %c0_126] : memref<9x8x4xf32, #tpu.memory_space<vmem>>, vector<1x8x4xf32>
    %166 = vector.shape_cast %165 : vector<1x8x4xf32> to vector<8x4xf32>
    %cst_127 = arith.constant dense<0.000000e+00> : vector<8x512xf32>
    %167 = tpu.matmul %166, %164, %cst_127 {dimension_numbers = #tpu.dot_dimension_numbers<[1], [0], [0], [1], [0, 0, 1, 1], [], []>} : vector<8x4xf32>, vector<4x512xf32>, vector<8x512xf32> -> vector<8x512xf32>
    %168 = arith.addf %159, %167 : vector<8x512xf32>
    %c496_i32_128 = arith.constant 496 : i32
    %169 = tpu.dynamic_rotate %111 by %c496_i32_128 dim 1 : vector<4x512xf32>, i32 -> vector<4x512xf32>
    %c7_129 = arith.constant 7 : index
    %c0_130 = arith.constant 0 : index
    %c0_131 = arith.constant 0 : index
    %170 = vector.load %arg3[%c7_129, %c0_130, %c0_131] : memref<9x1x512xf32, #tpu.memory_space<vmem>>, vector<1x1x512xf32>
    %171 = vector.shape_cast %170 : vector<1x1x512xf32> to vector<1x512xf32>
    %172 = vector.broadcast %171 : vector<1x512xf32> to vector<4x512xf32>
    %173 = arith.mulf %169, %172 : vector<4x512xf32>
    %c7_132 = arith.constant 7 : index
    %c0_133 = arith.constant 0 : index
    %c0_134 = arith.constant 0 : index
    %174 = vector.load %arg5[%c7_132, %c0_133, %c0_134] : memref<9x8x4xf32, #tpu.memory_space<vmem>>, vector<1x8x4xf32>
    %175 = vector.shape_cast %174 : vector<1x8x4xf32> to vector<8x4xf32>
    %cst_135 = arith.constant dense<0.000000e+00> : vector<8x512xf32>
    %176 = tpu.matmul %175, %173, %cst_135 {dimension_numbers = #tpu.dot_dimension_numbers<[1], [0], [0], [1], [0, 0, 1, 1], [], []>} : vector<8x4xf32>, vector<4x512xf32>, vector<8x512xf32> -> vector<8x512xf32>
    %177 = arith.addf %168, %176 : vector<8x512xf32>
    %c495_i32_136 = arith.constant 495 : i32
    %178 = tpu.dynamic_rotate %111 by %c495_i32_136 dim 1 : vector<4x512xf32>, i32 -> vector<4x512xf32>
    %c8_137 = arith.constant 8 : index
    %c0_138 = arith.constant 0 : index
    %c0_139 = arith.constant 0 : index
    %179 = vector.load %arg3[%c8_137, %c0_138, %c0_139] : memref<9x1x512xf32, #tpu.memory_space<vmem>>, vector<1x1x512xf32>
    %180 = vector.shape_cast %179 : vector<1x1x512xf32> to vector<1x512xf32>
    %181 = vector.broadcast %180 : vector<1x512xf32> to vector<4x512xf32>
    %182 = arith.mulf %178, %181 : vector<4x512xf32>
    %c8_140 = arith.constant 8 : index
    %c0_141 = arith.constant 0 : index
    %c0_142 = arith.constant 0 : index
    %183 = vector.load %arg5[%c8_140, %c0_141, %c0_142] : memref<9x8x4xf32, #tpu.memory_space<vmem>>, vector<1x8x4xf32>
    %184 = vector.shape_cast %183 : vector<1x8x4xf32> to vector<8x4xf32>
    %cst_143 = arith.constant dense<0.000000e+00> : vector<8x512xf32>
    %185 = tpu.matmul %184, %182, %cst_143 {dimension_numbers = #tpu.dot_dimension_numbers<[1], [0], [0], [1], [0, 0, 1, 1], [], []>} : vector<8x4xf32>, vector<4x512xf32>, vector<8x512xf32> -> vector<8x512xf32>
    %186 = arith.addf %177, %185 : vector<8x512xf32>
    %cst_144 = arith.constant dense<0.000000e+00> : vector<8xf32>
    %187 = vector.multi_reduction <add>, %186, %cst_144 [1] : vector<8x512xf32> to vector<8xf32>
    %188 = vector.shape_cast %187 : vector<8xf32> to vector<8x1xf32>
    %cst_145 = arith.constant 5.120000e+02 : f32
    %189 = vector.broadcast %cst_145 : f32 to vector<8x1xf32>
    %190 = arith.divf %188, %189 : vector<8x1xf32>
    %191 = vector.broadcast %190 : vector<8x1xf32> to vector<8x512xf32>
    %192 = arith.subf %186, %191 : vector<8x512xf32>
    %193 = arith.mulf %192, %192 : vector<8x512xf32>
    %cst_146 = arith.constant dense<0.000000e+00> : vector<8xf32>
    %194 = vector.multi_reduction <add>, %193, %cst_146 [1] : vector<8x512xf32> to vector<8xf32>
    %195 = vector.shape_cast %194 : vector<8xf32> to vector<8x1xf32>
    %cst_147 = arith.constant 5.120000e+02 : f32
    %196 = vector.broadcast %cst_147 : f32 to vector<8x1xf32>
    %197 = arith.divf %195, %196 : vector<8x1xf32>
    %c0_148 = arith.constant 0 : index
    %c0_149 = arith.constant 0 : index
    %198 = vector.load %arg8[%c0_148, %c0_149] : memref<8x1xf32, #tpu.memory_space<vmem>>, vector<8x1xf32>
    %cst_150 = arith.constant 9.99999974E-6 : f32
    %199 = vector.broadcast %cst_150 : f32 to vector<8x1xf32>
    %200 = arith.addf %197, %199 : vector<8x1xf32>
    %201 = math.rsqrt %200 : vector<8x1xf32>
    %202 = arith.mulf %198, %201 : vector<8x1xf32>
    %203 = vector.broadcast %202 : vector<8x1xf32> to vector<8x512xf32>
    %204 = arith.mulf %192, %203 : vector<8x512xf32>
    %c0_151 = arith.constant 0 : index
    %c0_152 = arith.constant 0 : index
    %205 = vector.load %arg9[%c0_151, %c0_152] : memref<8x1xf32, #tpu.memory_space<vmem>>, vector<8x1xf32>
    %206 = vector.broadcast %205 : vector<8x1xf32> to vector<8x512xf32>
    %207 = arith.addf %204, %206 : vector<8x512xf32>
    %cst_153 = arith.constant 0.000000e+00 : f32
    %208 = vector.broadcast %cst_153 : f32 to vector<8x512xf32>
    %209 = arith.maximumf %207, %208 : vector<8x512xf32>
    %210 = vector.extract_strided_slice %209 {offsets = [0, 0], sizes = [8, 256], strides = [1, 1]} : vector<8x512xf32> to vector<8x256xf32>
    %c0_154 = arith.constant 0 : index
    %c0_155 = arith.constant 0 : index
    %c0_156 = arith.constant 0 : index
    %211 = vector.load %arg10[%c0_154, %c0_155, %c0_156] : memref<2x8x256xf32, #tpu.memory_space<vmem>>, vector<1x8x256xf32>
    %212 = vector.shape_cast %211 : vector<1x8x256xf32> to vector<8x256xf32>
    %213 = vector.shape_cast %210 : vector<8x256xf32> to vector<1x8x256xf32>
    tpu.vector_store %arg10[%c0_154, %c0_155, %c0_156], %213 {strides = array<i32>} : memref<2x8x256xf32, #tpu.memory_space<vmem>>, vector<1x8x256xf32>,
    %214 = vector.extract_strided_slice %209 {offsets = [0, 256], sizes = [8, 256], strides = [1, 1]} : vector<8x512xf32> to vector<8x256xf32>
    %c1_157 = arith.constant 1 : index
    %c0_158 = arith.constant 0 : index
    %c0_159 = arith.constant 0 : index
    %215 = vector.load %arg10[%c1_157, %c0_158, %c0_159] : memref<2x8x256xf32, #tpu.memory_space<vmem>>, vector<1x8x256xf32>
    %216 = vector.shape_cast %215 : vector<1x8x256xf32> to vector<8x256xf32>
    %217 = vector.shape_cast %214 : vector<8x256xf32> to vector<1x8x256xf32>
    tpu.vector_store %arg10[%c1_157, %c0_158, %c0_159], %217 {strides = array<i32>} : memref<2x8x256xf32, #tpu.memory_space<vmem>>, vector<1x8x256xf32>,
    return
  }
}

</mosaic_0001>

<bundles_post_ra>
// kernel: up_forward.1
= control target key start
LH: loop header
LB: loop body
LE: loop exit
PB: predicated region body
PF: predicated region fallthrough
CT: control target
= control target key end

     0   :  { %vm69_vm0 = vcmask 1040384   ;;  %vm65_vm1 = vcmask 400384   ;;  %vm173_vm2 = vcmask 1043456   ;;  %s2523_s28 = smov 16   ;;  %s2525_s29 = smov 1   ;;  %v186_v36 = vlaneseq  ;;  %s3351_s2 = inlined_call_operand.vmem [shape: f32[49,256], index: 2, kind: input, shape index: {}]   ;;  %s3352_s0 = inlined_call_operand.vmem [shape: f32[2,4,256], index: 0, kind: input, shape index: {}]   ;;  %s3353_s1 = inlined_call_operand.vmem [shape: f32[2,4,49], index: 1, kind: input, shape index: {}]   ;;  %s3354_s3 = inlined_call_operand.vmem [shape: f32[9,1,512], index: 3, kind: input, shape index: {}]   ;;  %s3355_s4 = inlined_call_operand.vmem [shape: f32[9,4,8], index: 4, kind: input, shape index: {}]   ;;  %s3356_s6 = inlined_call_operand.vmem [shape: f32[4,1], index: 6, kind: input, shape index: {}]   ;;  %s3357_s7 = inlined_call_operand.vmem [shape: f32[4,1], index: 7, kind: input, shape index: {}]   ;;  %s3358_s5 = inlined_call_operand.vmem [shape: f32[9,8,4], index: 5, kind: input, shape index: {}]   ;;  %s3359_s8 = inlined_call_operand.vmem [shape: f32[8,1], index: 8, kind: input, shape index: {}]   ;;  %s3360_s9 = inlined_call_operand.vmem [shape: f32[8,1], index: 9, kind: input, shape index: {}]   ;;  %s3361_s10 = inlined_call_operand.vmem [shape: f32[2,8,256], index: 10, kind: output, shape index: {}]  }
   0x1   :  { %v62_v0 = vld [vmem:[%s3351_s2 + $0x60] sm:$0x1]  ;;  %v63_v1 = vld [vmem:[%s3351_s2 + $0x68] sm:$0x1]  ;;  %v60_v2 = vld [vmem:[%s3351_s2 + $0x50] sm:$0xff]  ;;  %s2526_s30 = smov 113  }
   0x2   :  { %2362 = vmatpush.msk.msra.mxu0 %vm69_vm0, %v62_v0  ;;  %2364 = vmatpush.msk.msra.mxu1 %vm69_vm0, %v63_v1  ;;  %v61_v3 = vld [vmem:[%s3351_s2 + $0x58] sm:$0xff]  ;;  %v58_v4 = vld [vmem:[%s3351_s2 + $0x40] sm:$0xff]  ;;  %v59_v5 = vld [vmem:[%s3351_s2 + $0x48] sm:$0xff]  ;;  %s2527_s11 = smov 127   ;;  %s2528_s12 = smov 112   ;;  %v2724_v38 = vand.u32 127, %v186_v36 }
   0x3   :  { %2367 = vmatpush.msk.msra.mxu2 %vm69_vm0, %v62_v0  ;;  %2369 = vmatpush.msk.msra.mxu3 %vm69_vm0, %v63_v1  ;;  %v56_v6 = vld [vmem:[%s3351_s2 + $0x30] sm:$0xff]  ;;  %v57_v7 = vld [vmem:[%s3351_s2 + $0x38] sm:$0xff]  ;;  %v35_v8 = vld [vmem:[%s3352_s0] sm:$0xff]  ;;  %s2529_s13 = smov 111   ;;  %vm238_vm4 = vcmask 64512   ;;  %vm1302_vm0 = vcmask 31744  }
   0x4   :  { %86 = vmatpush.msra.mxu0 %v60_v2  ;;  %106 = vmatpush.msra.mxu1 %v61_v3  ;;  %v54_v9 = vld [vmem:[%s3351_s2 + $0x20] sm:$0xff]  ;;  %v55_v10 = vld [vmem:[%s3351_s2 + $0x28] sm:$0xff]  ;;  %39 = vst [vmem:[#allocation1] ss:$2 sm:$0xff] %v35_v8  ;;  %v52_v11 = vld [vmem:[%s3351_s2 + $0x10] sm:$0xff]  ;;  %vm216_vm3 = vcmp.lt.s32.totalorder %v2724_v38, 16 }
   0x5   :  { %131 = vmatpush.msra.mxu2 %v60_v2  ;;  %151 = vmatpush.msra.mxu3 %v61_v3  ;;  %v53_v12 = vld [vmem:[%s3351_s2 + $0x18] sm:$0xff]  ;;  %v50_v13 = vld [vmem:[%s3351_s2] sm:$0xff]  ;;  %v51_v14 = vld [vmem:[%s3351_s2 + $0x8] sm:$0xff]  ;;  %vm188_vm5 = vcmp.lt.s32.totalorder %v2724_v38, 17  ;;  %vm413_vm6 = vcmp.lt.s32.totalorder %v2724_v38, 15  ;;  %vm530_vm7 = vcmp.lt.s32.totalorder %v2724_v38, 1 }
   0x6   :  { %87 = vmatpush.msra.mxu0 %v58_v4  ;;  %107 = vmatpush.msra.mxu1 %v59_v5  ;;  %v64_v15 = vld [vmem:[%s3353_s1] sm:$0xf]  ;;  %v2366_v16 = vld [vmem:[%s3353_s1 + $0x4] sm:$0xf]  ;;  %v2361_v18 = vld [vmem:[%s3352_s0 + $0x8] sm:$0xff]  ;;  %s2522_s1 = smov 17  }
   0x7   :  { %132 = vmatpush.msra.mxu2 %v58_v4  ;;  %152 = vmatpush.msra.mxu3 %v59_v5  ;;  %s2524_s0 = smov 15   ;;  %v2722_v37 = vld [vmem:[%s3354_s3 + $0x4] sm:$0xf]  ;;  %v2738_v46 = vld [vmem:[%s3354_s3] sm:$0xf]  ;;  %vm736_vm8 = vcmp.lt.s32.totalorder %v2724_v38, 127 }
   0x8   :  { %88 = vmatpush.msra.mxu0 %v56_v6  ;;  %108 = vmatpush.msra.mxu1 %v57_v7  ;;  %v225_v40 = vperm.slane %v2722_v37, 1  ;;  %v2372_v45 = vld [vmem:[%s3355_s4 + $0x4] sm:$0xf]  ;;  %v226_v47 = vperm.slane %v2722_v37, 2  ;;  %v224_v48 = vperm.slane %v2722_v37, 0  ;;  %v227_v49 = vperm.slane %v2722_v37, 3 }
   0x9   :  { %133 = vmatpush.msra.mxu2 %v56_v6  ;;  %153 = vmatpush.msra.mxu3 %v57_v7  ;;  %v197_v52 = vperm.slane %v2738_v46, 2  ;;  %v198_v62 = vperm.slane %v2738_v46, 3  ;;  %v2768_v63 = vld [vmem:[%s3354_s3 + $0x8] sm:$0xf]  ;;  %v3385_v0 = vperm.slane %v2738_v46, 1  ;;  %v195_v1 = vperm.slane %v2738_v46, 0 }
   0xa   :  { %89 = vmatpush.msra.mxu0 %v54_v9  ;;  %109 = vmatpush.msra.mxu1 %v55_v10  ;;  %v3384_v5 = vperm.slane %v2768_v63, 1  ;;  %vm853_vm9 = vcmp.lt.s32.totalorder %v2724_v38, 113  ;;  %vm970_vm10 = vcmp.lt.s32.totalorder %v2724_v38, 112  ;;  %vm1087_vm11 = vcmp.lt.s32.totalorder %v2724_v38, 111 }
   0xb   :  { %134 = vmatpush.msra.mxu2 %v54_v9  ;;  %154 = vmatpush.msra.mxu3 %v55_v10  ;;  %v40_v17 = vld.sshfl [vmem:[#allocation1] sm:$0xff pattern:$0x75316420]  ;;  %v41_v19 = vld.sshfl [vmem:[#allocation1 + $0x8] sm:$0xff pattern:$0x75316420] }
   0xc   :  { %90 = vmatpush.msra.mxu0 %v52_v11  ;;  %110 = vmatpush.msra.mxu1 %v53_v12  ;;  %45 = vst [vmem:[#allocation1] ss:$2 sm:$0xff] %v2361_v18 }
   0xd   :  { %135 = vmatpush.msra.mxu2 %v52_v11  ;;  %155 = vmatpush.msra.mxu3 %v53_v12 }
   0xe   :  { %91 = vmatpush.msra.mxu0 %v50_v13  ;;  %111 = vmatpush.msra.mxu1 %v51_v14 }
   0xf   :  { %2363 = vmatmul.msk.f32.vlgmr.msra.gmra.mxu0 %vm65_vm1, %v64_v15  ;;  %2365 = vmatmul.msk.f32.vlgmr.msra.gmra.mxu1 %vm65_vm1, %v64_v15  ;;  %v423_v15 = vperm.slane %v2768_v63, 2 }
  0x10   :  { %136 = vmatpush.msra.mxu2 %v50_v13  ;;  %156 = vmatpush.msra.mxu3 %v51_v14  ;;  %v207_v13 = vld [vmem:[%s3355_s4] sm:$0xf] }
  0x11   :  { %2368 = vmatmul.msk.f32.vlgmr.msra.gmra.mxu2 %vm65_vm1, %v2366_v16  ;;  %2370 = vmatmul.msk.f32.vlgmr.msra.gmra.mxu3 %vm65_vm1, %v2366_v16  ;;  %v3382_v16 = vperm.slane %v2768_v63, 0 }
  0x13   :  { %v46_v26 = vld.sshfl [vmem:[#allocation1] sm:$0xff pattern:$0x75316420]  ;;  %v47_v28 = vld.sshfl [vmem:[#allocation1 + $0x8] sm:$0xff pattern:$0x75316420] }
  0x8c   :  { %v93_v20 = vpop.f32.mrf.mxu0  ;;  %v113_v21 = vpop.f32.mrf.mxu1 }
  0x8d   :  { %v165_v22 = vrot.slane %v93_v20, 4  ;;  %v166_v23 = vrot.slane %v113_v21, 4 }
  0x8f   :  { %v2642_v24 = vsel %vm173_vm2, %v40_v17, %v165_v22  ;;  %v2645_v25 = vsel %vm173_vm2, %v41_v19, %v166_v23  ;;  %v3381_v17 = vperm.slane %v2768_v63, 3 }
  0x90   :  { %180 = vrot.lane.b32.xlu2 %v2645_v25, %s2522_s1  ;;  %210 = vrot.lane.b32.xlu0 %v2645_v25, %s2523_s28 }
  0x91   :  { %208 = vrot.lane.b32.xlu1 %v2642_v24, %s2523_s28 }
  0x94   :  { %v138_v27 = vpop.f32.mrf.mxu2  ;;  %v158_v29 = vpop.f32.mrf.mxu3 }
  0x95   :  { %v167_v30 = vrot.slane %v138_v27, 4  ;;  %v168_v31 = vrot.slane %v158_v29, 4 }
  0x97   :  { %v2654_v32 = vsel %vm173_vm2, %v46_v26, %v167_v30  ;;  %v2657_v33 = vsel %vm173_vm2, %v47_v28, %v168_v31  ;;  %v2382_v28 = vld [vmem:[%s3355_s4 + $0x8] sm:$0xf]  ;;  %v2823_v30 = vld [vmem:[%s3354_s3 + $0xc] sm:$0xf] }
  0x98   :  { %407 = vrot.lane.b32.xlu2 %v2645_v25, %s2524_s0  ;;  %212 = vrot.lane.b32.xlu0 %v2654_v32, %s2523_s28  ;;  %v3378_v31 = vperm.slane %v2823_v30, 3 }
  0x99   :  { %214 = vrot.lane.b32.xlu1 %v2657_v33, %s2523_s28 }
  0xa0   :  { %182 = vrot.lane.b32.xlu2 %v2654_v32, %s2522_s1  ;;  %184 = vrot.lane.b32.xlu0 %v2657_v33, %s2522_s1 }
  0xa1   :  { %178 = vrot.lane.b32.xlu1 %v2642_v24, %s2522_s1 }
  0xa8   :  { %405 = vrot.lane.b32.xlu2 %v2642_v24, %s2524_s0  ;;  %409 = vrot.lane.b32.xlu0 %v2654_v32, %s2524_s0 }
  0xa9   :  { %411 = vrot.lane.b32.xlu1 %v2657_v33, %s2524_s0 }
  0xb0   :  { %528 = vrot.lane.b32.xlu2 %v2657_v33, %s2525_s29  ;;  %524 = vrot.lane.b32.xlu0 %v2645_v25, %s2525_s29 }
  0xb1   :  { %526 = vrot.lane.b32.xlu1 %v2654_v32, %s2525_s29 }
  0xb8   :  { %847 = vrot.lane.b32.xlu2 %v2645_v25, %s2526_s30  ;;  %522 = vrot.lane.b32.xlu0 %v2642_v24, %s2525_s29 }
  0xb9   :  { %730 = vrot.lane.b32.xlu1 %v2645_v25, %s2527_s11 }
  0xc0   :  { %734 = vrot.lane.b32.xlu2 %v2657_v33, %s2527_s11  ;;  %728 = vrot.lane.b32.xlu0 %v2642_v24, %s2527_s11 }
  0xc1   :  { %732 = vrot.lane.b32.xlu1 %v2654_v32, %s2527_s11 }
  0xc8   :  { %849 = vrot.lane.b32.xlu2 %v2654_v32, %s2526_s30  ;;  %851 = vrot.lane.b32.xlu0 %v2657_v33, %s2526_s30 }
  0xc9   :  { %845 = vrot.lane.b32.xlu1 %v2642_v24, %s2526_s30 }
  0xd0   :  { %962 = vrot.lane.b32.xlu2 %v2642_v24, %s2528_s12  ;;  %966 = vrot.lane.b32.xlu0 %v2654_v32, %s2528_s12 }
  0xd1   :  { %968 = vrot.lane.b32.xlu1 %v2657_v33, %s2528_s12 }
  0xd8   :  { %1085 = vrot.lane.b32.xlu2 %v2657_v33, %s2529_s13  ;;  %964 = vrot.lane.b32.xlu0 %v2645_v25, %s2528_s12 }
  0xd9   :  { %1083 = vrot.lane.b32.xlu1 %v2654_v32, %s2529_s13 }
  0xe0   :  { %1079 = vrot.lane.b32.xlu0 %v2642_v24, %s2529_s13 }
  0xe1   :  { %1081 = vrot.lane.b32.xlu1 %v2645_v25, %s2529_s13 }
  0xea   :  { %v181_v34 = vpop.permute.xlu2 %180 }
  0xf2   :  { %v2717_v35 = vpop.permute.xlu2 %407 }
  0xfa   :  { %v183_v39 = vpop.permute.xlu2 %182 }
  0xfb   :  { %v190_v55 = vsel %vm188_vm5, %v181_v34, %v183_v39 }
  0xfc   :  { %v205_v61 = vmul.f32 %v197_v52, %v190_v55 }
 0x102   :  { %v211_v41 = vpop.permute.xlu0 %210  ;;  %v406_v50 = vpop.permute.xlu2 %405 }
 0x103   :  { %v209_v42 = vpop.permute.xlu1 %208  ;;  %v416_v10 = vsel %vm413_vm6, %v406_v50, %v2717_v35 }
 0x104   :  { %v219_v43 = vsel %vm216_vm3, %v209_v42, %v211_v41  ;;  %v430_v14 = vmul.f32 %v3384_v5, %v416_v10 }
 0x105   :  { %v233_v44 = vmul.f32 %v225_v40, %v219_v43 }
 0x107   :  { %277 = vmatpush.msrb.mxu1 %v233_v44  ;;  %v2388_v44 = vld [vmem:[%s3355_s4 + $0xc] sm:$0xf] }
 0x108   :  { %2374 = vmatmul.msk.f32.vlgmr.msrb.gmra.mxu1 %vm238_vm4, %v2372_v45 }
 0x10a   :  { %v213_v51 = vpop.permute.xlu0 %212  ;;  %v529_v6 = vpop.permute.xlu2 %528 }
 0x10b   :  { %v215_v53 = vpop.permute.xlu1 %214  ;;  %v218_v54 = vsel %vm216_vm3, %v211_v41, %v213_v51 }
 0x10c   :  { %v220_v56 = vsel %vm216_vm3, %v215_v53, %v209_v42  ;;  %v217_v57 = vsel %vm216_vm3, %v213_v51, %v215_v53  ;;  %v234_v58 = vmul.f32 %v226_v47, %v218_v54  ;;  %v3383_v51 = vperm.slane %v2823_v30, 1 }
 0x10d   :  { %v232_v59 = vmul.f32 %v224_v48, %v220_v56  ;;  %v235_v60 = vmul.f32 %v227_v49, %v217_v57  ;;  %v2860_v57 = vld [vmem:[%s3354_s3 + $0x14] sm:$0xf] }
 0x10e   :  { %297 = vmatpush.msrb.mxu2 %v234_v58  ;;  %v2393_v58 = vld [vmem:[%s3355_s4 + $0x10] sm:$0xf] }
 0x10f   :  { %257 = vmatpush.msrb.mxu0 %v232_v59  ;;  %317 = vmatpush.msrb.mxu3 %v235_v60  ;;  %v2870_v59 = vld [vmem:[%s3354_s3 + $0x18] sm:$0xf]  ;;  %v3374_v60 = vperm.slane %v2860_v57, 0 }
 0x110   :  { %2373 = vmatmul.msk.f32.vlgmr.msrb.gmra.mxu0 %vm238_vm4, %v2372_v45  ;;  %2375 = vmatmul.msk.f32.vlgmr.msrb.gmra.mxu2 %vm238_vm4, %v2372_v45 }
 0x111   :  { %2376 = vmatmul.msk.f32.vlgmr.msrb.gmra.mxu3 %vm238_vm4, %v2372_v45  ;;  %380 = vmatpush.msra.mxu2 %v205_v61  ;;  %v3377_v61 = vperm.slane %v2860_v57, 3 }
 0x112   :  { %v185_v2 = vpop.permute.xlu0 %184  ;;  %v2818_v29 = vpop.permute.xlu2 %847 }
 0x113   :  { %v179_v3 = vpop.permute.xlu1 %178  ;;  %v189_v4 = vsel %vm188_vm5, %v183_v39, %v185_v2 }
 0x114   :  { %v191_v7 = vsel %vm188_vm5, %v179_v3, %v181_v34  ;;  %v192_v8 = vsel %vm188_vm5, %v185_v2, %v179_v3  ;;  %v206_v9 = vmul.f32 %v198_v62, %v189_v4  ;;  %v3379_v34 = vperm.slane %v2823_v30, 2 }
 0x115   :  { %v204_v11 = vmul.f32 %v3385_v0, %v191_v7  ;;  %v203_v12 = vmul.f32 %v195_v1, %v192_v8  ;;  %v3373_v2 = vperm.slane %v2860_v57, 1  ;;  %v3376_v3 = vperm.slane %v2860_v57, 2 }
 0x116   :  { %400 = vmatpush.msra.mxu3 %v206_v9 }
 0x117   :  { %340 = vmatpush.msra.mxu0 %v203_v12  ;;  %360 = vmatpush.msra.mxu1 %v204_v11 }
 0x118   :  { %2377 = vmatmul.msk.f32.vlgmr.msra.gmra.mxu0 %vm238_vm4, %v207_v13  ;;  %2378 = vmatmul.msk.f32.vlgmr.msra.gmra.mxu1 %vm238_vm4, %v207_v13 }
 0x119   :  { %2379 = vmatmul.msk.f32.vlgmr.msra.gmra.mxu2 %vm238_vm4, %v207_v13  ;;  %2380 = vmatmul.msk.f32.vlgmr.msra.gmra.mxu3 %vm238_vm4, %v207_v13 }
 0x11a   :  { %473 = vmatpush.msrb.mxu1 %v430_v14  ;;  %v410_v18 = vpop.permute.xlu0 %409  ;;  %v735_v45 = vpop.permute.xlu2 %734 }
 0x11b   :  { %v412_v19 = vpop.permute.xlu1 %411  ;;  %v415_v20 = vsel %vm413_vm6, %v2717_v35, %v410_v18 }
 0x11c   :  { %v417_v21 = vsel %vm413_vm6, %v412_v19, %v406_v50  ;;  %v414_v22 = vsel %vm413_vm6, %v410_v18, %v412_v19  ;;  %v431_v23 = vmul.f32 %v423_v15, %v415_v20  ;;  %v3380_v50 = vperm.slane %v2823_v30, 0  ;;  %v2399_v19 = vld [vmem:[%s3355_s4 + $0x14] sm:$0xf] }
 0x11d   :  { %v429_v26 = vmul.f32 %v3382_v16, %v417_v21  ;;  %v432_v27 = vmul.f32 %v3381_v17, %v414_v22  ;;  %v3375_v21 = vperm.slane %v2870_v59, 2  ;;  %v3370_v22 = vperm.slane %v2870_v59, 0 }
 0x11e   :  { %493 = vmatpush.msrb.mxu2 %v431_v23  ;;  %v3369_v23 = vperm.slane %v2870_v59, 3 }
 0x11f   :  { %453 = vmatpush.msrb.mxu0 %v429_v26  ;;  %513 = vmatpush.msrb.mxu3 %v432_v27 }
 0x120   :  { %2383 = vmatmul.msk.f32.vlgmr.msrb.gmra.mxu0 %vm238_vm4, %v2382_v28  ;;  %2384 = vmatmul.msk.f32.vlgmr.msrb.gmra.mxu1 %vm238_vm4, %v2382_v28 }
 0x121   :  { %2385 = vmatmul.msk.f32.vlgmr.msrb.gmra.mxu2 %vm238_vm4, %v2382_v28  ;;  %2386 = vmatmul.msk.f32.vlgmr.msrb.gmra.mxu3 %vm238_vm4, %v2382_v28 }
 0x122   :  { %v525_v35 = vpop.permute.xlu0 %524  ;;  %v850_v4 = vpop.permute.xlu2 %849 }
 0x123   :  { %v527_v36 = vpop.permute.xlu1 %526  ;;  %v855_v13 = vsel %vm853_vm9, %v2818_v29, %v850_v4 }
 0x124   :  { %v531_v39 = vsel %vm530_vm7, %v527_v36, %v529_v6  ;;  %v532_v41 = vsel %vm530_vm7, %v525_v35, %v527_v36 }
 0x125   :  { %v549_v42 = vmul.f32 %v3378_v31, %v531_v39  ;;  %v548_v43 = vmul.f32 %v3379_v34, %v532_v41 }
 0x127   :  { %610 = vmatpush.msra.mxu2 %v548_v43  ;;  %630 = vmatpush.msra.mxu3 %v549_v42  ;;  %v2405_v43 = vld [vmem:[%s3355_s4 + $0x18] sm:$0xf] }
 0x129   :  { %699 = vmatpush.msrb.mxu2 %v2654_v32  ;;  %719 = vmatpush.msrb.mxu3 %v2657_v33 }
 0x12a   :  { %2391 = vmatmul.msk.f32.vlgmr.msra.gmra.mxu2 %vm238_vm4, %v2388_v44  ;;  %2392 = vmatmul.msk.f32.vlgmr.msra.gmra.mxu3 %vm238_vm4, %v2388_v44  ;;  %v523_v53 = vpop.permute.xlu0 %522 }
 0x12b   :  { %v731_v54 = vpop.permute.xlu1 %730  ;;  %v533_v55 = vsel %vm530_vm7, %v523_v53, %v525_v35  ;;  %v534_v56 = vsel %vm530_vm7, %v529_v6, %v523_v53 }
 0x12c   :  { %v546_v32 = vmul.f32 %v3380_v50, %v534_v56  ;;  %v547_v33 = vmul.f32 %v3383_v51, %v533_v55 }
 0x12e   :  { %570 = vmatpush.msra.mxu0 %v546_v32  ;;  %590 = vmatpush.msra.mxu1 %v547_v33 }
 0x12f   :  { %2389 = vmatmul.msk.f32.vlgmr.msra.gmra.mxu0 %vm238_vm4, %v2388_v44  ;;  %2390 = vmatmul.msk.f32.vlgmr.msra.gmra.mxu1 %vm238_vm4, %v2388_v44  ;;  %v963_v44 = vpop.permute.xlu2 %962 }
 0x130   :  { %659 = vmatpush.msrb.mxu0 %v2642_v24  ;;  %679 = vmatpush.msrb.mxu1 %v2645_v25  ;;  %v3372_v25 = vperm.slane %v2870_v59, 1 }
 0x132   :  { %2396 = vmatmul.msk.f32.vlgmr.msrb.gmra.mxu2 %vm238_vm4, %v2393_v58  ;;  %2397 = vmatmul.msk.f32.vlgmr.msrb.gmra.mxu3 %vm238_vm4, %v2393_v58  ;;  %v729_v24 = vpop.permute.xlu0 %728  ;;  %v870_v20 = vmul.f32 %v3372_v25, %v855_v13 }
 0x133   :  { %v733_v6 = vpop.permute.xlu1 %732  ;;  %v739_v7 = vsel %vm736_vm8, %v729_v24, %v731_v54  ;;  %v740_v8 = vsel %vm736_vm8, %v735_v45, %v729_v24  ;;  %v2956_v24 = vld [vmem:[%s3354_s3 + $0x20] sm:$0xf] }
 0x134   :  { %v737_v9 = vsel %vm736_vm8, %v733_v6, %v735_v45  ;;  %v738_v10 = vsel %vm736_vm8, %v731_v54, %v733_v6  ;;  %v752_v11 = vmul.f32 %v3374_v60, %v739_v7  ;;  %v755_v12 = vmul.f32 %v3377_v61, %v740_v8 }
 0x135   :  { %v753_v14 = vmul.f32 %v3373_v2, %v738_v10  ;;  %v754_v18 = vmul.f32 %v3376_v3, %v737_v9  ;;  %v3364_v8 = vperm.slane %v2956_v24, 2 }
 0x136   :  { %776 = vmatpush.msra.mxu0 %v752_v11  ;;  %836 = vmatpush.msra.mxu3 %v755_v12 }
 0x137   :  { %796 = vmatpush.msra.mxu1 %v753_v14  ;;  %816 = vmatpush.msra.mxu2 %v754_v18  ;;  %v1086_v10 = vpop.permute.xlu2 %1085 }
 0x138   :  { %2394 = vmatmul.msk.f32.vlgmr.msrb.gmra.mxu0 %vm238_vm4, %v2393_v58  ;;  %2395 = vmatmul.msk.f32.vlgmr.msrb.gmra.mxu1 %vm238_vm4, %v2393_v58 }
 0x139   :  { %913 = vmatpush.msrb.mxu1 %v870_v20 }
 0x13a   :  { %2402 = vmatmul.msk.f32.vlgmr.msra.gmra.mxu2 %vm238_vm4, %v2399_v19  ;;  %2403 = vmatmul.msk.f32.vlgmr.msra.gmra.mxu3 %vm238_vm4, %v2399_v19  ;;  %v852_v26 = vpop.permute.xlu0 %851 }
 0x13b   :  { %v846_v27 = vpop.permute.xlu1 %845  ;;  %v854_v28 = vsel %vm853_vm9, %v850_v4, %v852_v26  ;;  %v2411_v4 = vld [vmem:[%s3355_s4 + $0x1c] sm:$0xf] }
 0x13c   :  { %v856_v35 = vsel %vm853_vm9, %v846_v27, %v2818_v29  ;;  %v857_v36 = vsel %vm853_vm9, %v852_v26, %v846_v27  ;;  %v871_v39 = vmul.f32 %v3375_v21, %v854_v28  ;;  %v2933_v29 = vld [vmem:[%s3354_s3 + $0x1c] sm:$0xf]  ;;  %v2417_v26 = vld [vmem:[%s3355_s4 + $0x20] sm:$0xf]  ;;  %v3365_v27 = vperm.slane %v2956_v24, 3 }
 0x13d   :  { %v869_v41 = vmul.f32 %v3370_v22, %v856_v35  ;;  %v872_v42 = vmul.f32 %v3369_v23, %v857_v36  ;;  %v3366_v45 = vperm.slane %v2933_v29, 3  ;;  %v3367_v53 = vperm.slane %v2933_v29, 2 }
 0x13e   :  { %933 = vmatpush.msrb.mxu2 %v871_v39  ;;  %v3368_v6 = vperm.slane %v2933_v29, 0  ;;  %v3371_v7 = vperm.slane %v2933_v29, 1  ;;  %v3362_v28 = vperm.slane %v2956_v24, 1  ;;  %v3363_v35 = vperm.slane %v2956_v24, 0 }
 0x13f   :  { %893 = vmatpush.msrb.mxu0 %v869_v41  ;;  %953 = vmatpush.msrb.mxu3 %v872_v42 }
 0x140   :  { %2400 = vmatmul.msk.f32.vlgmr.msra.gmra.mxu0 %vm238_vm4, %v2399_v19  ;;  %2401 = vmatmul.msk.f32.vlgmr.msra.gmra.mxu1 %vm238_vm4, %v2399_v19 }
 0x142   :  { %2408 = vmatmul.msk.f32.vlgmr.msrb.gmra.mxu2 %vm238_vm4, %v2405_v43  ;;  %2409 = vmatmul.msk.f32.vlgmr.msrb.gmra.mxu3 %vm238_vm4, %v2405_v43  ;;  %v967_v54 = vpop.permute.xlu0 %966 }
 0x143   :  { %v969_v55 = vpop.permute.xlu1 %968 }
 0x144   :  { %v974_v56 = vsel %vm970_vm10, %v969_v55, %v963_v44  ;;  %v971_v32 = vsel %vm970_vm10, %v967_v54, %v969_v55 }
 0x145   :  { %v989_v33 = vmul.f32 %v3366_v45, %v974_v56  ;;  %v988_v58 = vmul.f32 %v3367_v53, %v971_v32 }
 0x147   :  { %1050 = vmatpush.msra.mxu2 %v988_v58  ;;  %1070 = vmatpush.msra.mxu3 %v989_v33 }
 0x148   :  { %2406 = vmatmul.msk.f32.vlgmr.msrb.gmra.mxu0 %vm238_vm4, %v2405_v43  ;;  %2407 = vmatmul.msk.f32.vlgmr.msrb.gmra.mxu1 %vm238_vm4, %v2405_v43 }
 0x14a   :  { %2414 = vmatmul.msk.f32.vlgmr.msra.gmra.mxu2 %vm238_vm4, %v2411_v4  ;;  %2415 = vmatmul.msk.f32.vlgmr.msra.gmra.mxu3 %vm238_vm4, %v2411_v4  ;;  %v965_v9 = vpop.permute.xlu0 %964 }
 0x14b   :  { %v1084_v11 = vpop.permute.xlu1 %1083  ;;  %v972_v12 = vsel %vm970_vm10, %v965_v9, %v967_v54  ;;  %v973_v13 = vsel %vm970_vm10, %v963_v44, %v965_v9 }
 0x14c   :  { %v1088_v14 = vsel %vm1087_vm11, %v1084_v11, %v1086_v10  ;;  %v986_v18 = vmul.f32 %v3368_v6, %v973_v13  ;;  %v987_v19 = vmul.f32 %v3371_v7, %v972_v12 }
 0x14d   :  { %v1105_v20 = vmul.f32 %v3364_v8, %v1088_v14 }
 0x14e   :  { %1010 = vmatpush.msra.mxu0 %v986_v18  ;;  %1030 = vmatpush.msra.mxu1 %v987_v19 }
 0x14f   :  { %1167 = vmatpush.msrb.mxu2 %v1105_v20 }
 0x150   :  { %2412 = vmatmul.msk.f32.vlgmr.msra.gmra.mxu0 %vm238_vm4, %v2411_v4  ;;  %2413 = vmatmul.msk.f32.vlgmr.msra.gmra.mxu1 %vm238_vm4, %v2411_v4 }
 0x152   :  { %2420 = vmatmul.msk.f32.vlgmr.msrb.gmra.mxu2 %vm238_vm4, %v2417_v26  ;;  %v1080_v36 = vpop.permute.xlu0 %1079 }
 0x153   :  { %v1082_v39 = vpop.permute.xlu1 %1081  ;;  %v1091_v41 = vsel %vm1087_vm11, %v1086_v10, %v1080_v36 }
 0x154   :  { %v1089_v42 = vsel %vm1087_vm11, %v1082_v39, %v1084_v11  ;;  %v1090_v43 = vsel %vm1087_vm11, %v1080_v36, %v1082_v39  ;;  %v1106_v44 = vmul.f32 %v3365_v27, %v1091_v41 }
 0x155   :  { %v1104_v54 = vmul.f32 %v3362_v28, %v1089_v42  ;;  %v1103_v55 = vmul.f32 %v3363_v35, %v1090_v43 }
 0x156   :  { %1187 = vmatpush.msrb.mxu3 %v1106_v44 }
 0x157   :  { %1127 = vmatpush.msrb.mxu0 %v1103_v55  ;;  %1147 = vmatpush.msrb.mxu1 %v1104_v54 }
 0x158   :  { %2418 = vmatmul.msk.f32.vlgmr.msrb.gmra.mxu0 %vm238_vm4, %v2417_v26  ;;  %2419 = vmatmul.msk.f32.vlgmr.msrb.gmra.mxu1 %vm238_vm4, %v2417_v26 }
 0x159   :  { %2421 = vmatmul.msk.f32.vlgmr.msrb.gmra.mxu3 %vm238_vm4, %v2417_v26 }
 0x185   :  { %v279_v32 = vpop.f32.mrf.mxu1 }
 0x18d   :  { %v259_v56 = vpop.f32.mrf.mxu0 }
 0x193   :  { %v299_v33 = vpop.f32.mrf.mxu2 }
 0x194   :  { %v319_v58 = vpop.f32.mrf.mxu3 }
 0x195   :  { %v342_v4 = vpop.f32.mrf.mxu0  ;;  %v362_v9 = vpop.f32.mrf.mxu1 }
 0x196   :  { %v343_v45 = vadd.f32 %v342_v4, %v259_v56  ;;  %v363_v53 = vadd.f32 %v362_v9, %v279_v32 }
 0x19c   :  { %v382_v10 = vpop.f32.mrf.mxu2  ;;  %v402_v11 = vpop.f32.mrf.mxu3 }
 0x19d   :  { %v455_v14 = vpop.f32.mrf.mxu0  ;;  %v475_v18 = vpop.f32.mrf.mxu1  ;;  %v383_v7 = vadd.f32 %v382_v10, %v299_v33  ;;  %v403_v50 = vadd.f32 %v402_v11, %v319_v58 }
 0x19e   :  { %v518_v6 = vadd.f32 %v455_v14, %v343_v45  ;;  %v519_v23 = vadd.f32 %v475_v18, %v363_v53 }
 0x1a4   :  { %v495_v12 = vpop.f32.mrf.mxu2  ;;  %v515_v13 = vpop.f32.mrf.mxu3 }
 0x1a5   :  { %v520_v21 = vadd.f32 %v495_v12, %v383_v7  ;;  %v521_v5 = vadd.f32 %v515_v13, %v403_v50 }
 0x1ac   :  { %v572_v36 = vpop.f32.mrf.mxu0  ;;  %v592_v39 = vpop.f32.mrf.mxu1 }
 0x1ad   :  { %v612_v19 = vpop.f32.mrf.mxu2  ;;  %v632_v20 = vpop.f32.mrf.mxu3  ;;  %v635_v25 = vadd.f32 %v572_v36, %v518_v6  ;;  %v636_v2 = vadd.f32 %v592_v39, %v519_v23 }
 0x1ae   :  { %v637_v17 = vadd.f32 %v612_v19, %v520_v21  ;;  %v638_v45 = vadd.f32 %v632_v20, %v521_v5 }
 0x1b5   :  { %v701_v41 = vpop.f32.mrf.mxu2  ;;  %v661_v42 = vpop.f32.mrf.mxu0 }
 0x1b6   :  { %v681_v43 = vpop.f32.mrf.mxu1  ;;  %v721_v26 = vpop.f32.mrf.mxu3  ;;  %v724_v31 = vadd.f32 %v661_v42, %v635_v25  ;;  %v726_v0 = vadd.f32 %v701_v41, %v637_v17 }
 0x1b7   :  { %v725_v34 = vadd.f32 %v681_v43, %v636_v2  ;;  %v727_v23 = vadd.f32 %v721_v26, %v638_v45 }
 0x1bd   :  { %v818_v44 = vpop.f32.mrf.mxu2  ;;  %v778_v54 = vpop.f32.mrf.mxu0 }
 0x1be   :  { %v798_v55 = vpop.f32.mrf.mxu1  ;;  %v838_v28 = vpop.f32.mrf.mxu3  ;;  %v841_v16 = vadd.f32 %v778_v54, %v724_v31  ;;  %v843_v53 = vadd.f32 %v818_v44, %v726_v0 }
 0x1bf   :  { %v842_v51 = vadd.f32 %v798_v55, %v725_v34  ;;  %v844_v58 = vadd.f32 %v838_v28, %v727_v23 }
 0x1c5   :  { %v935_v35 = vpop.f32.mrf.mxu2  ;;  %v895_v8 = vpop.f32.mrf.mxu0 }
 0x1c6   :  { %v915_v27 = vpop.f32.mrf.mxu1  ;;  %v955_v22 = vpop.f32.mrf.mxu3  ;;  %v958_v56 = vadd.f32 %v895_v8, %v841_v16  ;;  %v960_v9 = vadd.f32 %v935_v35, %v843_v53  ;;  %v2530_v35 = vmov 512.0  }
 0x1c7   :  { %v959_v32 = vadd.f32 %v915_v27, %v842_v51  ;;  %v961_v16 = vadd.f32 %v955_v22, %v844_v58  ;;  %2516 = vrcp.f32 %v2530_v35  ;;  %v1231_v58 = vld [vmem:[%s3356_s6] sm:$0xf] }
 0x1cd   :  { %v1052_v60 = vpop.f32.mrf.mxu2  ;;  %v1012_v3 = vpop.f32.mrf.mxu0 }
 0x1ce   :  { %v1032_v61 = vpop.f32.mrf.mxu1  ;;  %v1072_v4 = vpop.f32.mrf.mxu3  ;;  %v1075_v33 = vadd.f32 %v1012_v3, %v958_v56  ;;  %v1077_v21 = vadd.f32 %v1052_v60, %v960_v9 }
 0x1cf   :  { %v1076_v6 = vadd.f32 %v1032_v61, %v959_v32  ;;  %v1078_v0 = vadd.f32 %v1072_v4, %v961_v16  ;;  %v2517_v60 = vpop.eup %2516  ;;  %v1253_v16 = vld [vmem:[%s3357_s7] sm:$0xf] }
 0x1d0   :  { %v1206_v28 = vmul.f32 512.0, %v2517_v60  ;;  %vm1210_vm12 = vweird.f32 %v2517_v60 }
 0x1d2   :  { %v1207_v11 = vsub.f32 1.0, %v1206_v28 }
 0x1d4   :  { %v1208_v13 = vmul.f32 %v2517_v60, %v1207_v11 }
 0x1d5   :  { %v1129_v7 = vpop.f32.mrf.mxu0  ;;  %v1169_v12 = vpop.f32.mrf.mxu2 }
 0x1d6   :  { %v1149_v10 = vpop.f32.mrf.mxu1  ;;  %v1192_v25 = vadd.f32 %v1129_v7, %v1075_v33  ;;  %v1194_v34 = vadd.f32 %v1169_v12, %v1077_v21  ;;  %v1209_v14 = vadd.f32 %v2517_v60, %v1208_v13  ;;  %v2531_v33 = vmov 0  }
 0x1d7   :  { %v1193_v2 = vadd.f32 %v1149_v10, %v1076_v6  ;;  %2514 = vset.pattern.permute.xlu1 %v2531_v33  ;;  %2515 = vset.pattern.permute.xlu0 %v2531_v33 }
 0x1d8   :  { %v1196_v31 = vsel %vm173_vm2, %v1192_v25, 0.0  ;;  %v1199_v51 = vsel %vm173_vm2, %v1194_v34, 0.0  ;;  %v3006_v22 = vsel %vm1210_vm12, %v2517_v60, %v1209_v14 }
 0x1d9   :  { %v1197_v17 = vsel %vm173_vm2, %v1193_v2, 0.0 }
 0x1da   :  { %v1198_v5 = vadd.f32 %v1197_v17, %v1196_v31 }
 0x1dc   :  { %v1189_v50 = vpop.f32.mrf.mxu3  ;;  %v1200_v3 = vadd.f32 %v1199_v51, %v1198_v5 }
 0x1dd   :  { %v1195_v61 = vadd.f32 %v1189_v50, %v1078_v0 }
 0x1df   :  { %v1201_v8 = vsel %vm173_vm2, %v1195_v61, 0.0 }
 0x1e0   :  { %v1202_v27 = vadd.f32 %v1201_v8, %v1200_v3 }
 0x1e2   :  { %1203 = vadd.xlane.f32.xlu2 %v1202_v27 }
 0x255   :  { %v1204_v18 = vpop.xlane.xlu2 %1203 }
 0x256   :  { %v1212_v19 = vmul.f32 %v3006_v22, %v1204_v18 }
 0x258   :  { %v1213_v20 = vsub.f32 %v1192_v25, %v1212_v19  ;;  %v1214_v36 = vsub.f32 %v1193_v2, %v1212_v19  ;;  %v1215_v39 = vsub.f32 %v1194_v34, %v1212_v19  ;;  %v1216_v41 = vsub.f32 %v1195_v61, %v1212_v19 }
 0x25a   :  { %v1217_v42 = vmul.f32 %v1213_v20, %v1213_v20  ;;  %v1218_v43 = vmul.f32 %v1214_v36, %v1214_v36  ;;  %v1219_v26 = vmul.f32 %v1215_v39, %v1215_v39  ;;  %v1220_v44 = vmul.f32 %v1216_v41, %v1216_v41 }
 0x25c   :  { %v1221_v54 = vsel %vm173_vm2, %v1217_v42, 0.0  ;;  %v1222_v55 = vsel %vm173_vm2, %v1218_v43, 0.0  ;;  %v1224_v32 = vsel %vm173_vm2, %v1219_v26, 0.0  ;;  %v1226_v53 = vsel %vm173_vm2, %v1220_v44, 0.0 }
 0x25d   :  { %v1223_v56 = vadd.f32 %v1222_v55, %v1221_v54 }
 0x25f   :  { %v1225_v45 = vadd.f32 %v1224_v32, %v1223_v56 }
 0x261   :  { %v1227_v4 = vadd.f32 %v1226_v53, %v1225_v45 }
 0x263   :  { %1228 = vadd.xlane.f32.xlu0 %v1227_v4  ;;  %v1283_v4 = vld [vmem:[%s3358_s5] sm:$0xff] }
 0x2d6   :  { %v1229_v6 = vpop.xlane.xlu0 %1228 }
 0x2d7   :  { %v1230_v23 = vmul.f32 %v1229_v6, %v3006_v22 }
 0x2d9   :  { %v1232_v9 = vadd.f32 1e-05, %v1230_v23 }
 0x2db   :  { %2518 = vrsqrt.f32 %v1232_v9  ;;  %vm1239_vm14 = vweird.f32 %v1232_v9 }
 0x2e1   :  { %v2519_v7 = vpop.eup %2518 }
 0x2e2   :  { %v1234_v10 = vmul.f32 %v2519_v7, %v1232_v9  ;;  %vm1240_vm13 = vweird.f32 %v2519_v7 }
 0x2e3   :  { %vm1241_vm15 = vmor %vm1239_vm14, %vm1240_vm13 }
 0x2e4   :  { %v1235_v12 = vmul.f32 %v2519_v7, %v1234_v10 }
 0x2e6   :  { %v1236_v25 = vmul.f32 0.5, %v1235_v12 }
 0x2e8   :  { %v1237_v2 = vsub.f32 1.5, %v1236_v25 }
 0x2ea   :  { %v1238_v21 = vmul.f32 %v2519_v7, %v1237_v2 }
 0x2ec   :  { %v1242_v31 = vsel %vm1241_vm15, %v2519_v7, %v1238_v21 }
 0x2ed   :  { %v1243_v17 = vmul.f32 %v1242_v31, %v1231_v58  ;;  %v3386_v31 = vperm.slane %v2738_v46, 1 }
 0x2ef   :  { %1246 = vperm.xlu1 %2514, %v1243_v17  }
 0x2f7   :  { %1256 = vperm.xlu1 %2514, %v1253_v16   ;;  %v3387_v16 = vperm.slane %v2768_v63, 1 }
 0x361   :  { %v1247_v34 = vpop.permute.xlu1 %1246 }
 0x362   :  { %v1249_v5 = vmul.f32 %v1247_v34, %v1213_v20  ;;  %v1250_v0 = vmul.f32 %v1247_v34, %v1214_v36  ;;  %v1251_v50 = vmul.f32 %v1247_v34, %v1215_v39  ;;  %v1252_v28 = vmul.f32 %v1247_v34, %v1216_v41  ;;  %v2422_v39 = vld [vmem:[%s3358_s5 + $0x8] sm:$0xff] }
 0x369   :  { %v1257_v51 = vpop.permute.xlu1 %1256 }
 0x36a   :  { %v1259_v61 = vadd.f32 %v1257_v51, %v1249_v5  ;;  %v1260_v3 = vadd.f32 %v1257_v51, %v1250_v0  ;;  %v1261_v8 = vadd.f32 %v1257_v51, %v1251_v50  ;;  %v1262_v11 = vadd.f32 %v1257_v51, %v1252_v28 }
 0x36b   :  { %v3388_v5 = vperm.slane %v2823_v30, 1  ;;  %v3390_v28 = vperm.slane %v2768_v63, 3 }
 0x36c   :  { %v3020_v27 = vmax.f32 %v1259_v61, 0.0  ;;  %v3022_v35 = vmax.f32 %v1260_v3, 0.0  ;;  %v3024_v60 = vmax.f32 %v1261_v8, 0.0  ;;  %v3038_v13 = vmax.f32 %v1262_v11, 0.0 }
 0x36d   :  { %v3389_v3 = vperm.slane %v2768_v63, 0 }
 0x36e   :  { %1271 = vrot.lane.b32.xlu0 %v3024_v60, %s2522_s1  ;;  %1286 = vrot.lane.b32.xlu1 %v3022_v35, %s2523_s28 }
 0x36f   :  { %1284 = vrot.lane.b32.xlu2 %v3020_v27, %s2523_s28 }
 0x376   :  { %1497 = vrot.lane.b32.xlu0 %v3024_v60, %s2524_s0  ;;  %1288 = vrot.lane.b32.xlu1 %v3024_v60, %s2523_s28 }
 0x377   :  { %1495 = vrot.lane.b32.xlu2 %v3022_v35, %s2524_s0 }
 0x37e   :  { %1612 = vrot.lane.b32.xlu0 %v3022_v35, %s2525_s29  ;;  %1290 = vrot.lane.b32.xlu1 %v3038_v13, %s2523_s28 }
 0x37f   :  { %1493 = vrot.lane.b32.xlu2 %v3020_v27, %s2524_s0 }
 0x386   :  { %1269 = vrot.lane.b32.xlu1 %v3022_v35, %s2522_s1  ;;  %1610 = vrot.lane.b32.xlu0 %v3020_v27, %s2525_s29 }
 0x387   :  { %1616 = vrot.lane.b32.xlu2 %v3038_v13, %s2525_s29 }
 0x38e   :  { %1273 = vrot.lane.b32.xlu1 %v3038_v13, %s2522_s1  ;;  %1828 = vrot.lane.b32.xlu0 %v3020_v27, %s2527_s11 }
 0x38f   :  { %1834 = vrot.lane.b32.xlu2 %v3038_v13, %s2527_s11 }
 0x396   :  { %1951 = vrot.lane.b32.xlu0 %v3038_v13, %s2526_s30  ;;  %1267 = vrot.lane.b32.xlu1 %v3020_v27, %s2522_s1 }
 0x397   :  { %1949 = vrot.lane.b32.xlu2 %v3024_v60, %s2526_s30 }
 0x39e   :  { %2066 = vrot.lane.b32.xlu0 %v3024_v60, %s2528_s12  ;;  %1499 = vrot.lane.b32.xlu1 %v3038_v13, %s2524_s0 }
 0x39f   :  { %1947 = vrot.lane.b32.xlu2 %v3022_v35, %s2526_s30 }
 0x3a6   :  { %2064 = vrot.lane.b32.xlu0 %v3022_v35, %s2528_s12  ;;  %1614 = vrot.lane.b32.xlu1 %v3024_v60, %s2525_s29 }
 0x3a7   :  { %2062 = vrot.lane.b32.xlu2 %v3020_v27, %s2528_s12 }
 0x3ae   :  { %2179 = vrot.lane.b32.xlu0 %v3020_v27, %s2529_s13  ;;  %1832 = vrot.lane.b32.xlu1 %v3024_v60, %s2527_s11 }
 0x3af   :  { %2185 = vrot.lane.b32.xlu2 %v3038_v13, %s2529_s13 }
 0x3b6   :  { %1830 = vrot.lane.b32.xlu1 %v3022_v35, %s2527_s11 }
 0x3be   :  { %1945 = vrot.lane.b32.xlu1 %v3020_v27, %s2526_s30 }
 0x3c6   :  { %2068 = vrot.lane.b32.xlu1 %v3038_v13, %s2528_s12 }
 0x3c9   :  { %v1285_v14 = vpop.permute.xlu2 %1284 }
 0x3ce   :  { %2183 = vrot.lane.b32.xlu1 %v3024_v60, %s2529_s13 }
 0x3d1   :  { %v1496_v32 = vpop.permute.xlu2 %1495 }
 0x3d6   :  { %2181 = vrot.lane.b32.xlu1 %v3022_v35, %s2529_s13 }
 0x3d9   :  { %v1494_v33 = vpop.permute.xlu2 %1493 }
 0x3da   :  { %v1503_v12 = vsel %vm413_vm6, %v1494_v33, %v1496_v32 }
 0x3db   :  { %v1506_v34 = vmul.f32 %v1503_v12, %v3387_v16 }
 0x3e0   :  { %v1287_v18 = vpop.permute.xlu1 %1286  ;;  %v1272_v20 = vpop.permute.xlu0 %1271 }
 0x3e1   :  { %v1294_v19 = vsel %vm216_vm3, %v1285_v14, %v1287_v18  ;;  %v1617_v7 = vpop.permute.xlu2 %1616 }
 0x3e2   :  { %v1297_v36 = vmul.f32 %v1294_v19, %v225_v40 }
 0x3e4   :  { %2425 = vmatpush.msk.msra.mxu1 %vm173_vm2, %v1297_v36 }
 0x3e5   :  { %2426 = vmatmul.msk.f32.vlgmr.msra.gmra.mxu1 %vm1302_vm0, %v2422_v39 }
 0x3e8   :  { %v1289_v41 = vpop.permute.xlu1 %1288  ;;  %v1498_v26 = vpop.permute.xlu0 %1497 }
 0x3e9   :  { %v1293_v42 = vsel %vm216_vm3, %v1287_v18, %v1289_v41  ;;  %v1502_v45 = vsel %vm413_vm6, %v1496_v32, %v1498_v26  ;;  %v3395_v32 = vperm.slane %v2860_v57, 2 }
 0x3ea   :  { %v1298_v43 = vmul.f32 %v1293_v42, %v226_v47  ;;  %v3393_v42 = vperm.slane %v2823_v30, 3 }
 0x3ec   :  { %2427 = vmatpush.msk.msra.mxu2 %vm173_vm2, %v1298_v43 }
 0x3ed   :  { %2428 = vmatmul.msk.f32.vlgmr.msra.gmra.mxu2 %vm1302_vm0, %v2422_v39 }
 0x3f0   :  { %v1291_v40 = vpop.permute.xlu1 %1290  ;;  %v1613_v47 = vpop.permute.xlu0 %1612 }
 0x3f1   :  { %v1292_v44 = vsel %vm216_vm3, %v1289_v41, %v1291_v40  ;;  %v1295_v54 = vsel %vm216_vm3, %v1291_v40, %v1285_v14  ;;  %v3391_v14 = vperm.slane %v2823_v30, 0 }
 0x3f2   :  { %v1296_v55 = vmul.f32 %v1295_v54, %v224_v48  ;;  %v1299_v56 = vmul.f32 %v1292_v44, %v227_v49  ;;  %v1507_v49 = vmul.f32 %v1502_v45, %v423_v15  ;;  %v2439_v15 = vld [vmem:[%s3358_s5 + $0x10] sm:$0xff]  ;;  %v3396_v45 = vperm.slane %v2870_v59, 2 }
 0x3f4   :  { %2423 = vmatpush.msk.msra.mxu0 %vm173_vm2, %v1296_v55  ;;  %2429 = vmatpush.msk.msra.mxu3 %vm173_vm2, %v1299_v56 }
 0x3f5   :  { %2424 = vmatmul.msk.f32.vlgmr.msra.gmra.mxu0 %vm1302_vm0, %v2422_v39  ;;  %2430 = vmatmul.msk.f32.vlgmr.msra.gmra.mxu3 %vm1302_vm0, %v2422_v39  ;;  %v3392_v39 = vperm.slane %v2823_v30, 2  ;;  %v3394_v30 = vperm.slane %v2860_v57, 3 }
 0x3f8   :  { %v1270_v53 = vpop.permute.xlu1 %1269  ;;  %v1611_v6 = vpop.permute.xlu0 %1610 }
 0x3f9   :  { %v1276_v48 = vsel %vm188_vm5, %v1270_v53, %v1272_v20  ;;  %v1620_v2 = vsel %vm530_vm7, %v1611_v6, %v1613_v47  ;;  %v1621_v50 = vsel %vm530_vm7, %v1617_v7, %v1611_v6  ;;  %v3397_v6 = vperm.slane %v2860_v57, 0 }
 0x3fa   :  { %v1281_v37 = vmul.f32 %v1276_v48, %v197_v52  ;;  %v1623_v0 = vmul.f32 %v1620_v2, %v3388_v5  ;;  %v1622_v18 = vmul.f32 %v1621_v50, %v3391_v14  ;;  %v3405_v14 = vperm.slane %v2933_v29, 3 }
 0x3fc   :  { %2435 = vmatpush.msk.msrb.mxu2 %vm173_vm2, %v1281_v37 }
 0x3fd   :  { %2436 = vmatmul.msk.f32.vlgmr.msrb.gmra.mxu2 %vm1302_vm0, %v1283_v4 }
 0x3fe   :  { %2444 = vmatpush.msk.msra.mxu2 %vm173_vm2, %v1507_v49 }
 0x400   :  { %v1274_v23 = vpop.permute.xlu1 %1273  ;;  %v3151_v58 = vpop.permute.xlu0 %1828 }
 0x401   :  { %v1275_v9 = vsel %vm188_vm5, %v1272_v20, %v1274_v23 }
 0x402   :  { %v1282_v52 = vmul.f32 %v1275_v9, %v198_v62  ;;  %v3398_v9 = vperm.slane %v2860_v57, 1  ;;  %v3400_v57 = vperm.slane %v2933_v29, 1 }
 0x404   :  { %2437 = vmatpush.msk.msrb.mxu3 %vm173_vm2, %v1282_v52 }
 0x405   :  { %2438 = vmatmul.msk.f32.vlgmr.msrb.gmra.mxu3 %vm1302_vm0, %v1283_v4  ;;  %2445 = vmatmul.msk.f32.vlgmr.msra.gmra.mxu2 %vm1302_vm0, %v2439_v15 }
 0x408   :  { %v1268_v10 = vpop.permute.xlu1 %1267  ;;  %v3179_v19 = vpop.permute.xlu0 %1951 }
 0x409   :  { %v1277_v25 = vsel %vm188_vm5, %v1268_v10, %v1270_v53  ;;  %v1278_v62 = vsel %vm188_vm5, %v1274_v23, %v1268_v10  ;;  %v3399_v10 = vperm.slane %v2870_v59, 1 }
 0x40a   :  { %v1279_v21 = vmul.f32 %v1278_v62, %v195_v1  ;;  %v1280_v17 = vmul.f32 %v1277_v25, %v3386_v31  ;;  %v1835_v1 = vpop.permute.xlu2 %1834 }
 0x40c   :  { %2431 = vmatpush.msk.msrb.mxu0 %vm173_vm2, %v1279_v21  ;;  %2433 = vmatpush.msk.msrb.mxu1 %vm173_vm2, %v1280_v17  ;;  %v3401_v17 = vperm.slane %v2870_v59, 0 }
 0x40d   :  { %2432 = vmatmul.msk.f32.vlgmr.msrb.gmra.mxu0 %vm1302_vm0, %v1283_v4  ;;  %2434 = vmatmul.msk.f32.vlgmr.msrb.gmra.mxu1 %vm1302_vm0, %v1283_v4 }
 0x40e   :  { %2442 = vmatpush.msk.msra.mxu1 %vm173_vm2, %v1506_v34  ;;  %v3402_v34 = vperm.slane %v2870_v59, 3 }
 0x410   :  { %2451 = vmatpush.msk.msrb.mxu1 %vm173_vm2, %v1623_v0  ;;  %v1500_v46 = vpop.permute.xlu1 %1499  ;;  %v2067_v44 = vpop.permute.xlu0 %2066  ;;  %v2475_v0 = vld [vmem:[%s3358_s5 + $0x30] sm:$0xff] }
 0x411   :  { %v1501_v51 = vsel %vm413_vm6, %v1498_v26, %v1500_v46  ;;  %v1504_v61 = vsel %vm413_vm6, %v1500_v46, %v1494_v33  ;;  %v3403_v46 = vperm.slane %v2933_v29, 0 }
 0x412   :  { %v1505_v8 = vmul.f32 %v1504_v61, %v3389_v3  ;;  %v1508_v11 = vmul.f32 %v1501_v51, %v3390_v28  ;;  %v1950_v26 = vpop.permute.xlu2 %1949  ;;  %v3404_v28 = vperm.slane %v2933_v29, 2 }
 0x413   :  { %v1953_v56 = vsel %vm853_vm9, %v1950_v26, %v3179_v19 }
 0x414   :  { %2440 = vmatpush.msk.msra.mxu0 %vm173_vm2, %v1505_v8  ;;  %2446 = vmatpush.msk.msra.mxu3 %vm173_vm2, %v1508_v11  ;;  %v1959_v53 = vmul.f32 %v1953_v56, %v3396_v45 }
 0x415   :  { %2441 = vmatmul.msk.f32.vlgmr.msra.gmra.mxu0 %vm1302_vm0, %v2439_v15  ;;  %2443 = vmatmul.msk.f32.vlgmr.msra.gmra.mxu1 %vm1302_vm0, %v2439_v15 }
 0x416   :  { %2447 = vmatmul.msk.f32.vlgmr.msra.gmra.mxu3 %vm1302_vm0, %v2439_v15  ;;  %2449 = vmatpush.msk.msrb.mxu0 %vm173_vm2, %v1622_v18  ;;  %v2466_v15 = vld [vmem:[%s3358_s5 + $0x28] sm:$0xff] }
 0x417   :  { %2460 = vmatpush.msk.msra.mxu1 %vm173_vm2, %v3022_v35  ;;  %v2448_v35 = vld [vmem:[%s3358_s5 + $0x18] sm:$0xff] }
 0x418   :  { %2458 = vmatpush.msk.msra.mxu0 %vm173_vm2, %v3020_v27  ;;  %v1615_v63 = vpop.permute.xlu1 %1614  ;;  %v1839_v27 = vsel %vm736_vm8, %v1835_v1, %v3151_v58  ;;  %v2065_v48 = vpop.permute.xlu0 %2064 }
 0x419   :  { %v1618_v20 = vsel %vm530_vm7, %v1615_v63, %v1617_v7  ;;  %v1619_v36 = vsel %vm530_vm7, %v1613_v47, %v1615_v63  ;;  %v1843_v40 = vmul.f32 %v1839_v27, %v3394_v30  ;;  %v2071_v7 = vsel %vm970_vm10, %v2065_v48, %v2067_v44 }
 0x41a   :  { %v1624_v41 = vmul.f32 %v1619_v36, %v3392_v39  ;;  %v1625_v43 = vmul.f32 %v1618_v20, %v3393_v42  ;;  %v2075_v25 = vmul.f32 %v2071_v7, %v3400_v57  ;;  %v3406_v63 = vperm.slane %v2956_v24, 3  ;;  %v2493_v42 = vld [vmem:[%s3358_s5 + $0x40] sm:$0xff] }
 0x41b   :  { %v3407_v39 = vperm.slane %v2956_v24, 2  ;;  %v3408_v27 = vperm.slane %v2956_v24, 0 }
 0x41c   :  { %2453 = vmatpush.msk.msrb.mxu2 %vm173_vm2, %v1624_v41  ;;  %2455 = vmatpush.msk.msrb.mxu3 %vm173_vm2, %v1625_v43 }
 0x41d   :  { %2450 = vmatmul.msk.f32.vlgmr.msrb.gmra.mxu0 %vm1302_vm0, %v2448_v35  ;;  %2452 = vmatmul.msk.f32.vlgmr.msrb.gmra.mxu1 %vm1302_vm0, %v2448_v35 }
 0x41e   :  { %2454 = vmatmul.msk.f32.vlgmr.msrb.gmra.mxu2 %vm1302_vm0, %v2448_v35  ;;  %2456 = vmatmul.msk.f32.vlgmr.msrb.gmra.mxu3 %vm1302_vm0, %v2448_v35 }
 0x41f   :  { %2462 = vmatpush.msk.msra.mxu2 %vm173_vm2, %v3024_v60  ;;  %2464 = vmatpush.msk.msra.mxu3 %vm173_vm2, %v3038_v13  ;;  %v2457_v60 = vld [vmem:[%s3358_s5 + $0x20] sm:$0xff]  ;;  %v1948_v13 = vpop.permute.xlu2 %1947 }
 0x420   :  { %v1833_v54 = vpop.permute.xlu1 %1832  ;;  %v1954_v33 = vsel %vm853_vm9, %v1948_v13, %v1950_v26  ;;  %v2180_v59 = vpop.permute.xlu0 %2179 }
 0x421   :  { %2473 = vmatpush.msk.msrb.mxu3 %vm173_vm2, %v1843_v40  ;;  %v1836_v55 = vsel %vm736_vm8, %v1833_v54, %v1835_v1  ;;  %v1958_v12 = vmul.f32 %v1954_v33, %v3399_v10  ;;  %v3409_v40 = vperm.slane %v2956_v24, 1 }
 0x422   :  { %v1842_v47 = vmul.f32 %v1836_v55, %v3395_v32 }
 0x424   :  { %2471 = vmatpush.msk.msrb.mxu2 %vm173_vm2, %v1842_v47 }
 0x425   :  { %2459 = vmatmul.msk.f32.vlgmr.msra.gmra.mxu0 %vm1302_vm0, %v2457_v60  ;;  %2461 = vmatmul.msk.f32.vlgmr.msra.gmra.mxu1 %vm1302_vm0, %v2457_v60 }
 0x426   :  { %2463 = vmatmul.msk.f32.vlgmr.msra.gmra.mxu2 %vm1302_vm0, %v2457_v60  ;;  %2465 = vmatmul.msk.f32.vlgmr.msra.gmra.mxu3 %vm1302_vm0, %v2457_v60 }
 0x427   :  { %2480 = vmatpush.msk.msra.mxu2 %vm173_vm2, %v1959_v53  ;;  %v2063_v62 = vpop.permute.xlu2 %2062 }
 0x428   :  { %v1831_v37 = vpop.permute.xlu1 %1830  ;;  %v2072_v31 = vsel %vm970_vm10, %v2063_v62, %v2065_v48 }
 0x429   :  { %v1837_v49 = vsel %vm736_vm8, %v1831_v37, %v1833_v54  ;;  %v1838_v4 = vsel %vm736_vm8, %v3151_v58, %v1831_v37  ;;  %v2074_v1 = vmul.f32 %v2072_v31, %v3403_v46 }
 0x42a   :  { %v1840_v23 = vmul.f32 %v1838_v4, %v3397_v6  ;;  %v1841_v52 = vmul.f32 %v1837_v49, %v3398_v9 }
 0x42c   :  { %2467 = vmatpush.msk.msrb.mxu0 %vm173_vm2, %v1840_v23  ;;  %2469 = vmatpush.msk.msrb.mxu1 %vm173_vm2, %v1841_v52 }
 0x42d   :  { %2468 = vmatmul.msk.f32.vlgmr.msrb.gmra.mxu0 %vm1302_vm0, %v2466_v15  ;;  %2470 = vmatmul.msk.f32.vlgmr.msrb.gmra.mxu1 %vm1302_vm0, %v2466_v15 }
 0x42e   :  { %2472 = vmatmul.msk.f32.vlgmr.msrb.gmra.mxu2 %vm1302_vm0, %v2466_v15  ;;  %2474 = vmatmul.msk.f32.vlgmr.msrb.gmra.mxu3 %vm1302_vm0, %v2466_v15 }
 0x42f   :  { %2478 = vmatpush.msk.msra.mxu1 %vm173_vm2, %v1958_v12  ;;  %v2186_v51 = vpop.permute.xlu2 %2185 }
 0x430   :  { %v1946_v2 = vpop.permute.xlu1 %1945  ;;  %v2190_v8 = vsel %vm1087_vm11, %v2186_v51, %v2180_v59 }
 0x431   :  { %2487 = vmatpush.msk.msrb.mxu1 %vm173_vm2, %v2075_v25  ;;  %v1955_v58 = vsel %vm853_vm9, %v1946_v2, %v1948_v13  ;;  %v1956_v21 = vsel %vm853_vm9, %v3179_v19, %v1946_v2  ;;  %v2484_v19 = vld [vmem:[%s3358_s5 + $0x38] sm:$0xff]  ;;  %v2194_v20 = vmul.f32 %v2190_v8, %v3406_v63 }
 0x432   :  { %v1957_v16 = vmul.f32 %v1955_v58, %v3401_v17  ;;  %v1960_v5 = vmul.f32 %v1956_v21, %v3402_v34 }
 0x434   :  { %2476 = vmatpush.msk.msra.mxu0 %vm173_vm2, %v1957_v16  ;;  %2482 = vmatpush.msk.msra.mxu3 %vm173_vm2, %v1960_v5 }
 0x435   :  { %2477 = vmatmul.msk.f32.vlgmr.msra.gmra.mxu0 %vm1302_vm0, %v2475_v0  ;;  %2479 = vmatmul.msk.f32.vlgmr.msra.gmra.mxu1 %vm1302_vm0, %v2475_v0 }
 0x436   :  { %2481 = vmatmul.msk.f32.vlgmr.msra.gmra.mxu2 %vm1302_vm0, %v2475_v0  ;;  %2483 = vmatmul.msk.f32.vlgmr.msra.gmra.mxu3 %vm1302_vm0, %v2475_v0 }
 0x437   :  { %2485 = vmatpush.msk.msrb.mxu0 %vm173_vm2, %v2074_v1 }
 0x438   :  { %v2069_v50 = vpop.permute.xlu1 %2068 }
 0x439   :  { %v2070_v61 = vsel %vm970_vm10, %v2067_v44, %v2069_v50  ;;  %v2073_v3 = vsel %vm970_vm10, %v2069_v50, %v2063_v62 }
 0x43a   :  { %v2076_v11 = vmul.f32 %v2070_v61, %v3404_v28  ;;  %v2077_v18 = vmul.f32 %v2073_v3, %v3405_v14 }
 0x43c   :  { %2489 = vmatpush.msk.msrb.mxu2 %vm173_vm2, %v2076_v11  ;;  %2491 = vmatpush.msk.msrb.mxu3 %vm173_vm2, %v2077_v18 }
 0x43d   :  { %2486 = vmatmul.msk.f32.vlgmr.msrb.gmra.mxu0 %vm1302_vm0, %v2484_v19  ;;  %2488 = vmatmul.msk.f32.vlgmr.msrb.gmra.mxu1 %vm1302_vm0, %v2484_v19 }
 0x43e   :  { %2490 = vmatmul.msk.f32.vlgmr.msrb.gmra.mxu2 %vm1302_vm0, %v2484_v19  ;;  %2492 = vmatmul.msk.f32.vlgmr.msrb.gmra.mxu3 %vm1302_vm0, %v2484_v19 }
 0x43f   :  { %2500 = vmatpush.msk.msra.mxu3 %vm173_vm2, %v2194_v20 }
 0x440   :  { %v2184_v29 = vpop.permute.xlu1 %2183 }
 0x441   :  { %v2187_v36 = vsel %vm1087_vm11, %v2184_v29, %v2186_v51 }
 0x442   :  { %v2193_v41 = vmul.f32 %v2187_v36, %v3407_v39 }
 0x444   :  { %2498 = vmatpush.msk.msra.mxu2 %vm173_vm2, %v2193_v41 }
 0x446   :  { %2499 = vmatmul.msk.f32.vlgmr.msra.gmra.mxu2 %vm1302_vm0, %v2493_v42  ;;  %2501 = vmatmul.msk.f32.vlgmr.msra.gmra.mxu3 %vm1302_vm0, %v2493_v42 }
 0x448   :  { %v2182_v43 = vpop.permute.xlu1 %2181 }
 0x449   :  { %v2188_v35 = vsel %vm1087_vm11, %v2182_v43, %v2184_v29  ;;  %v2189_v26 = vsel %vm1087_vm11, %v2180_v59, %v2182_v43 }
 0x44a   :  { %v2191_v30 = vmul.f32 %v2189_v26, %v3408_v27  ;;  %v2192_v44 = vmul.f32 %v2188_v35, %v3409_v40 }
 0x44c   :  { %2494 = vmatpush.msk.msra.mxu0 %vm173_vm2, %v2191_v30  ;;  %2496 = vmatpush.msk.msra.mxu1 %vm173_vm2, %v2192_v44 }
 0x44d   :  { %2495 = vmatmul.msk.f32.vlgmr.msra.gmra.mxu0 %vm1302_vm0, %v2493_v42  ;;  %2497 = vmatmul.msk.f32.vlgmr.msra.gmra.mxu1 %vm1302_vm0, %v2493_v42 }
 0x462   :  { %v1355_v55 = vpop.f32.mrf.mxu1 }
 0x470   :  { %v1375_v56 = vpop.f32.mrf.mxu2 }
 0x472   :  { %v1335_v54 = vpop.f32.mrf.mxu0 }
 0x478   :  { %v1395_v32 = vpop.f32.mrf.mxu3 }
 0x480   :  { %v1470_v60 = vpop.f32.mrf.mxu2 }
 0x481   :  { %v1471_v31 = vadd.f32 %v1470_v60, %v1375_v56 }
 0x488   :  { %v1490_v13 = vpop.f32.mrf.mxu3  ;;  %v1583_v24 = vpop.f32.mrf.mxu2 }
 0x489   :  { %v1491_v34 = vadd.f32 %v1490_v13, %v1395_v32  ;;  %v1608_v5 = vadd.f32 %v1583_v24, %v1471_v31 }
 0x48a   :  { %v1430_v38 = vpop.f32.mrf.mxu0  ;;  %v1450_v47 = vpop.f32.mrf.mxu1 }
 0x48b   :  { %v1431_v58 = vadd.f32 %v1430_v38, %v1335_v54  ;;  %v1451_v21 = vadd.f32 %v1450_v47, %v1355_v55 }
 0x492   :  { %v1543_v45 = vpop.f32.mrf.mxu0  ;;  %v1563_v53 = vpop.f32.mrf.mxu1 }
 0x493   :  { %v1606_v17 = vadd.f32 %v1543_v45, %v1431_v58  ;;  %v1607_v16 = vadd.f32 %v1563_v53, %v1451_v21  ;;  %v2316_v21 = vld [vmem:[%s3359_s8] sm:$0xff] }
 0x499   :  { %v1603_v48 = vpop.f32.mrf.mxu3 }
 0x49a   :  { %v1660_v37 = vpop.f32.mrf.mxu0  ;;  %v1680_v49 = vpop.f32.mrf.mxu1  ;;  %v1609_v61 = vadd.f32 %v1603_v48, %v1491_v34 }
 0x49b   :  { %v1723_v0 = vadd.f32 %v1660_v37, %v1606_v17  ;;  %v1724_v46 = vadd.f32 %v1680_v49, %v1607_v16 }
 0x4a1   :  { %v1700_v4 = vpop.f32.mrf.mxu2  ;;  %v1720_v33 = vpop.f32.mrf.mxu3 }
 0x4a2   :  { %v1761_v6 = vpop.f32.mrf.mxu0  ;;  %v1781_v23 = vpop.f32.mrf.mxu1  ;;  %v1725_v3 = vadd.f32 %v1700_v4, %v1608_v5  ;;  %v1726_v11 = vadd.f32 %v1720_v33, %v1609_v61 }
 0x4a3   :  { %v1824_v8 = vadd.f32 %v1761_v6, %v1723_v0  ;;  %v1825_v28 = vadd.f32 %v1781_v23, %v1724_v46 }
 0x4a9   :  { %v1801_v9 = vpop.f32.mrf.mxu2  ;;  %v1821_v52 = vpop.f32.mrf.mxu3 }
 0x4aa   :  { %v1878_v15 = vpop.f32.mrf.mxu0  ;;  %v1898_v7 = vpop.f32.mrf.mxu1  ;;  %v1826_v14 = vadd.f32 %v1801_v9, %v1725_v3  ;;  %v1827_v63 = vadd.f32 %v1821_v52, %v1726_v11 }
 0x4ab   :  { %v1941_v18 = vadd.f32 %v1878_v15, %v1824_v8  ;;  %v1942_v19 = vadd.f32 %v1898_v7, %v1825_v28 }
 0x4b1   :  { %v1918_v10 = vpop.f32.mrf.mxu2  ;;  %v1938_v12 = vpop.f32.mrf.mxu3 }
 0x4b2   :  { %v1995_v57 = vpop.f32.mrf.mxu0  ;;  %v2015_v25 = vpop.f32.mrf.mxu1  ;;  %v1943_v20 = vadd.f32 %v1918_v10, %v1826_v14  ;;  %v1944_v39 = vadd.f32 %v1938_v12, %v1827_v63 }
 0x4b3   :  { %v2058_v29 = vadd.f32 %v1995_v57, %v1941_v18  ;;  %v2059_v36 = vadd.f32 %v2015_v25, %v1942_v19 }
 0x4b9   :  { %v2035_v62 = vpop.f32.mrf.mxu2  ;;  %v2055_v2 = vpop.f32.mrf.mxu3 }
 0x4ba   :  { %v2112_v1 = vpop.f32.mrf.mxu0  ;;  %v2132_v50 = vpop.f32.mrf.mxu1  ;;  %v2060_v41 = vadd.f32 %v2035_v62, %v1943_v20  ;;  %v2061_v30 = vadd.f32 %v2055_v2, %v1944_v39 }
 0x4bb   :  { %v2175_v42 = vadd.f32 %v2112_v1, %v2058_v29  ;;  %v2176_v43 = vadd.f32 %v2132_v50, %v2059_v36 }
 0x4c1   :  { %v2152_v59 = vpop.f32.mrf.mxu2  ;;  %v2172_v51 = vpop.f32.mrf.mxu3 }
 0x4c2   :  { %v2177_v40 = vadd.f32 %v2152_v59, %v2060_v41  ;;  %v2178_v56 = vadd.f32 %v2172_v51, %v2061_v30 }
 0x4c9   :  { %v2269_v35 = vpop.f32.mrf.mxu2  ;;  %v2289_v55 = vpop.f32.mrf.mxu3 }
 0x4ca   :  { %v2229_v26 = vpop.f32.mrf.mxu0  ;;  %v2249_v27 = vpop.f32.mrf.mxu1  ;;  %v2294_v32 = vadd.f32 %v2269_v35, %v2177_v40  ;;  %v2295_v47 = vadd.f32 %v2289_v55, %v2178_v56 }
 0x4cb   :  { %v2292_v44 = vadd.f32 %v2229_v26, %v2175_v42  ;;  %v2293_v54 = vadd.f32 %v2249_v27, %v2176_v43 }
 0x4cd   :  { %v2296_v38 = vadd.f32 %v2293_v54, %v2292_v44 }
 0x4cf   :  { %v2297_v60 = vadd.f32 %v2296_v38, %v2294_v32 }
 0x4d1   :  { %v2298_v13 = vadd.f32 %v2297_v60, %v2295_v47 }
 0x4d3   :  { %2299 = vadd.xlane.f32.xlu2 %v2298_v13 }
 0x546   :  { %v2300_v45 = vpop.xlane.xlu2 %2299 }
 0x547   :  { %v2301_v53 = vmul.f32 %v2300_v45, %v3006_v22 }
 0x549   :  { %v2302_v24 = vsub.f32 %v2292_v44, %v2301_v53  ;;  %v2303_v48 = vsub.f32 %v2293_v54, %v2301_v53  ;;  %v2304_v37 = vsub.f32 %v2294_v32, %v2301_v53  ;;  %v2305_v49 = vsub.f32 %v2295_v47, %v2301_v53 }
 0x54b   :  { %v2306_v4 = vmul.f32 %v2302_v24, %v2302_v24  ;;  %v2307_v33 = vmul.f32 %v2303_v48, %v2303_v48  ;;  %v2308_v6 = vmul.f32 %v2304_v37, %v2304_v37  ;;  %v2309_v9 = vmul.f32 %v2305_v49, %v2305_v49 }
 0x54d   :  { %v2310_v23 = vadd.f32 %v2307_v33, %v2306_v4 }
 0x54f   :  { %v2311_v52 = vadd.f32 %v2310_v23, %v2308_v6 }
 0x551   :  { %v2312_v15 = vadd.f32 %v2311_v52, %v2309_v9 }
 0x553   :  { %2313 = vadd.xlane.f32.xlu0 %v2312_v15 }
 0x5c6   :  { %v2314_v7 = vpop.xlane.xlu0 %2313 }
 0x5c7   :  { %v2315_v10 = vmul.f32 %v2314_v7, %v3006_v22  ;;  %v2338_v22 = vld [vmem:[%s3360_s9] sm:$0xff] }
 0x5c9   :  { %v2317_v12 = vadd.f32 1e-05, %v2315_v10 }
 0x5cb   :  { %2520 = vrsqrt.f32 %v2317_v12  ;;  %vm2324_vm2 = vweird.f32 %v2317_v12 }
 0x5d1   :  { %v2521_v57 = vpop.eup %2520 }
 0x5d2   :  { %v2319_v25 = vmul.f32 %v2521_v57, %v2317_v12  ;;  %vm2325_vm1 = vweird.f32 %v2521_v57 }
 0x5d3   :  { %vm2326_vm3 = vmor %vm2324_vm2, %vm2325_vm1 }
 0x5d4   :  { %v2320_v62 = vmul.f32 %v2521_v57, %v2319_v25 }
 0x5d6   :  { %v2321_v2 = vmul.f32 0.5, %v2320_v62 }
 0x5d8   :  { %v2322_v58 = vsub.f32 1.5, %v2321_v2 }
 0x5da   :  { %v2323_v31 = vmul.f32 %v2521_v57, %v2322_v58 }
 0x5dc   :  { %v2327_v17 = vsel %vm2326_vm3, %v2521_v57, %v2323_v31 }
 0x5dd   :  { %v2328_v16 = vmul.f32 %v2327_v17, %v2316_v21 }
 0x5df   :  { %2331 = vperm.xlu1 %2514, %v2328_v16  }
 0x5e7   :  { %2341 = vperm.xlu1 %2514, %v2338_v22  }
 0x651   :  { %v2332_v34 = vpop.permute.xlu1 %2331 }
 0x652   :  { %v2334_v5 = vmul.f32 %v2332_v34, %v2302_v24  ;;  %v2335_v0 = vmul.f32 %v2332_v34, %v2303_v48  ;;  %v2336_v46 = vmul.f32 %v2332_v34, %v2304_v37  ;;  %v2337_v1 = vmul.f32 %v2332_v34, %v2305_v49 }
 0x659   :  { %v2342_v59 = vpop.permute.xlu1 %2341 }
 0x65a   :  { %v2344_v50 = vadd.f32 %v2342_v59, %v2334_v5  ;;  %v2345_v51 = vadd.f32 %v2342_v59, %v2335_v0  ;;  %v2346_v61 = vadd.f32 %v2342_v59, %v2336_v46  ;;  %v2347_v3 = vadd.f32 %v2342_v59, %v2337_v1 }
 0x65c   :  { %v2348_v8 = vmax.f32 %v2344_v50, 0.0  ;;  %v2349_v28 = vmax.f32 %v2345_v51, 0.0  ;;  %v2350_v11 = vmax.f32 %v2346_v61, 0.0  ;;  %v2351_v14 = vmax.f32 %v2347_v3, 0.0 }
 0x65e   :  { %2352 = vst [vmem:[%s3361_s10] sm:$0xff] %v2348_v8 }
 0x65f   :  { %2353 = vst [vmem:[%s3361_s10 + $0x8] sm:$0xff] %v2349_v28 }
 0x660   :  { %2502 = vst [vmem:[%s3361_s10 + $0x10] sm:$0xff] %v2350_v11 }
 0x661   :  { %2503 = vst [vmem:[%s3361_s10 + $0x18] sm:$0xff] %v2351_v14 }

</bundles_post_ra>
